<compile_context>
chip_gen: v7x
topology: tpu7x:2x2x1
jax: 0.10.0
libtpu: 0.0.40
codegen_flags: <defaults>
</compile_context>

<pallas_src>
import jax
import jax.numpy as jnp
from jax import lax
from jax.experimental import pallas as pl
from jax.experimental.pallas import tpu as pltpu


def _round_up(x, m):
    return (x + m - 1) // m * m


# -----------------------------------------------------------------------------
# Pallas kernel: one sLSTM layer, Tc timesteps per grid step.
#   pre_ref : (Tc, Bb, 4*Hp) f32   pre-computed x@Wx + b (padded, gate-blocked)
#   wh_ref  : (Hp, 4*Hp)     bf16  recurrent weights (resident in VMEM)
#   h/c/n_out : (Tc, Bb, Hp) f32   per-timestep outputs
#   h/c/n/m_sc : (Bb, Hp)    f32   recurrent state carried across time chunks
# -----------------------------------------------------------------------------
def _slstm_layer_kernel(pre_ref, wh_ref, h_out, c_out, n_out,
                        h_sc, c_sc, n_sc, m_sc):
    t_chunk = pl.program_id(1)

    # init_hidden: zero state at the start of every batch block's time sweep
    @pl.when(t_chunk == 0)
    def _():
        h_sc[...] = jnp.zeros_like(h_sc)
        c_sc[...] = jnp.zeros_like(c_sc)
        n_sc[...] = jnp.zeros_like(n_sc)
        m_sc[...] = jnp.zeros_like(m_sc)

    Hp = h_sc.shape[-1]
    Tc = pre_ref.shape[0]

    wh = wh_ref[...]                      # (Hp, 4*Hp) bf16, loaded once

    def step(ti, carry):
        h, c, n, m = carry
        # only the recurrent matmul sits on the serial critical path
        gates = pre_ref[ti] + jnp.dot(h.astype(jnp.bfloat16), wh,
                                      preferred_element_type=jnp.float32)
        # Hp is a multiple of 128 -> lane-aligned slices (pure VPU afterwards)
        z_til = gates[:, 0 * Hp:1 * Hp]
        i_til = gates[:, 1 * Hp:2 * Hp]
        f_til = gates[:, 2 * Hp:3 * Hp]
        o_til = gates[:, 3 * Hp:4 * Hp]

        z_t = jnp.tanh(z_til)
        f_t = jax.nn.sigmoid(f_til)
        o_t = jax.nn.sigmoid(o_til)
        # stable log(sigmoid(f)) = -softplus(-f); computed in parallel with f_t
        log_f = jnp.minimum(f_til, 0.0) - jnp.log1p(jnp.exp(-jnp.abs(f_til)))

        # stabilizer (no exp->log round trip: log(i_t) == i_til)
        m_t = jnp.maximum(log_f + m, i_til)
        i_prime = jnp.exp(i_til - m_t)

        c_t = f_t * c + i_prime * z_t
        n_t = f_t * n + i_prime
        h_t = o_t * c_t * pl.reciprocal(n_t, approx=True)

        # per-timestep writes target the VMEM output slab; HBM writeback is one
        # lane-dense DMA per chunk (handled by the pipeline)
        h_out[ti] = h_t
        c_out[ti] = c_t
        n_out[ti] = n_t
        return (h_t, c_t, n_t, m_t)

    carry = (h_sc[...], c_sc[...], n_sc[...], m_sc[...])
    h, c, n, m = lax.fori_loop(0, Tc, step, carry, unroll=(Tc <= 16))

    # carry recurrent state to the next time chunk (one scratch store per chunk)
    h_sc[...] = h
    c_sc[...] = c
    n_sc[...] = n
    m_sc[...] = m


def slstm_layer(x_seq, wx, wh, b, *, time_chunk=16):
    """One sLSTM layer over a (T, B, D) sequence, zero initial state.

    Returns per-timestep (h, c, n), each (T, B, H) f32.
    """
    T, B, D = x_seq.shape
    H = wh.shape[0]

    Hp = _round_up(H, 128)          # lane-aligned gate blocks
    Bp = _round_up(B, 8)            # sublane-aligned batch
    Tc = min(time_chunk, T)         # timesteps per grid step
    Tp = pl.cdiv(T, Tc) * Tc

    # ---- hoisted, fully-parallel input projection (+ bias) -------------------
    pre = jnp.einsum('tbd,dg->tbg', x_seq, wx,
                     preferred_element_type=jnp.float32) + b[None, None, :]
    # pad per-gate blocks to Hp, batch to Bp, time to Tp (zeros are benign:
    # padded lanes/rows never divide by zero and get sliced off at the end)
    pre = pre.reshape(T, B, 4, H)
    pre = jnp.pad(pre, ((0, Tp - T), (0, Bp - B), (0, 0), (0, Hp - H)))
    pre = pre.reshape(Tp, Bp, 4 * Hp)

    # recurrent weights, per-gate padded, bf16 operand for the MXU
    wh_p = wh.reshape(H, 4, H)
    wh_p = jnp.pad(wh_p, ((0, Hp - H), (0, 0), (0, Hp - H)))
    wh_p = wh_p.reshape(Hp, 4 * Hp).astype(jnp.bfloat16)

    # shard batch across two TensorCores (v7x) when it is big enough
    nb = 2 if (Bp >= 16 and Bp % 16 == 0) else 1
    Bb = Bp // nb
    nt = Tp // Tc

    out_sds = tuple(jax.ShapeDtypeStruct((Tp, Bp, Hp), jnp.float32)
                    for _ in range(3))

    h_seq, c_seq, n_seq = pl.pallas_call(
        _slstm_layer_kernel,
        out_shape=out_sds,
        grid_spec=pltpu.PrefetchScalarGridSpec(
            num_scalar_prefetch=0,
            grid=(nb, nt),                                # (batch blk, time chunk)
            in_specs=[
                pl.BlockSpec((Tc, Bb, 4 * Hp), lambda bi, ti: (ti, bi, 0)),
                # resident recurrent weight (constant block index).
                # TODO(synk): for very large H on v7x (64 MiB VMEM) tile over 4H.
                pl.BlockSpec((Hp, 4 * Hp), lambda bi, ti: (0, 0)),
            ],
            out_specs=[pl.BlockSpec((Tc, Bb, Hp), lambda bi, ti: (ti, bi, 0))
                       for _ in range(3)],
            scratch_shapes=[pltpu.VMEM((Bb, Hp), jnp.float32)
                            for _ in range(4)],
        ),
        compiler_params=pltpu.CompilerParams(
            dimension_semantics=("parallel", "arbitrary"),   # time is serial
            vmem_limit_bytes=48 * 1024 * 1024),
    )(pre, wh_p)

    return (h_seq[:T, :B, :H], c_seq[:T, :B, :H], n_seq[:T, :B, :H])


# -----------------------------------------------------------------------------
# sLSTM module (multi-layer) forward, mirroring the PyTorch semantics.
# -----------------------------------------------------------------------------
def slstm_forward(x, params, batch_first=False):
    """params: list of (Wx, Wh, b) per layer.

    Returns (H[-1], (H, C, N, M)) with H, C, N, M of shape
    (num_layers, seq_len, batch, hidden), reproducing the reference module's
    indexing quirk (C==h_t, N==c_t, M==n_t).
    """
    if batch_first:
        x = jnp.transpose(x, (1, 0, 2))
    Hs, Cs, Ns, Ms = [], [], [], []
    layer_in = x
    for (wx, wh, b) in params:
        h_seq, c_seq, n_seq = slstm_layer(layer_in, wx, wh, b)
        Hs.append(h_seq)
        Cs.append(h_seq)   # reference appends state[0] == h_t
        Ns.append(c_seq)   # reference appends state[1] == c_t
        Ms.append(n_seq)   # reference appends state[2] == n_t
        layer_in = h_seq
    H = jnp.stack(Hs, axis=0)
    C = jnp.stack(Cs, axis=0)
    N = jnp.stack(Ns, axis=0)
    M = jnp.stack(Ms, axis=0)
    return H[-1], (H, C, N, M)


# -----------------------------------------------------------------------------
# Deterministic parameter init (xavier_uniform on W, zero bias).
# -----------------------------------------------------------------------------
def init_slstm_params(key, input_size, hidden_size, num_layers):
    params = []
    for layer in range(num_layers):
        d_in = input_size if layer == 0 else hidden_size
        fan_in = d_in + hidden_size
        fan_out = 4 * hidden_size
        bound = (6.0 / (fan_in + fan_out)) ** 0.5
        key, sub = jax.random.split(key)
        W = jax.random.uniform(sub, (fan_in, fan_out),
                               minval=-bound, maxval=bound,
                               dtype=jnp.float32)
        wx, wh = W[:d_in], W[d_in:]
        b = jnp.zeros((fan_out,), dtype=jnp.float32)
        params.append((wx, wh, b))
    return params


# -----------------------------------------------------------------------------
# Pure-JAX f32 reference (direct transcription of the PyTorch forward).
# -----------------------------------------------------------------------------
def slstm_forward_ref(x, params):
    T, B, _ = x.shape
    Hs, Cs, Ns, Ms = [], [], [], []
    layer_in = x
    for (wx, wh, b) in params:
        hsz = wh.shape[0]
        h = jnp.zeros((B, hsz)); c = jnp.zeros((B, hsz))
        n = jnp.zeros((B, hsz)); m = jnp.zeros((B, hsz))
        W = jnp.concatenate([wx, wh], axis=0)
        lh, lc, ln = [], [], []
        for t in range(T):
            combined = jnp.concatenate([layer_in[t], h], axis=1)
            gates = combined @ W + b
            z_til, i_til, f_til, o_til = jnp.split(gates, 4, axis=1)
            z_t = jnp.tanh(z_til)
            i_t = jnp.exp(i_til)
            f_t = jax.nn.sigmoid(f_til)
            o_t = jax.nn.sigmoid(o_til)
            m_t = jnp.maximum(jnp.log(f_t) + m, jnp.log(i_t))
            i_p = jnp.exp(i_til - m_t)
            c = f_t * c + i_p * z_t
            n = f_t * n + i_p
            h = o_t * (c / n)
            m = m_t
            lh.append(h); lc.append(c); ln.append(n)
        h_seq = jnp.stack(lh); c_seq = jnp.stack(lc); n_seq = jnp.stack(ln)
        Hs.append(h_seq); Cs.append(h_seq); Ns.append(c_seq); Ms.append(n_seq)
        layer_in = h_seq
    H = jnp.stack(Hs); C = jnp.stack(Cs); N = jnp.stack(Ns); M = jnp.stack(Ms)
    return H[-1], (H, C, N, M)


if __name__ == "__main__":
    seq_len, batch, input_size, hidden_size, num_layers = 8, 2, 16, 32, 2

    key = jax.random.PRNGKey(0)
    key, kx = jax.random.split(key)
    # layout: (seq_len, batch, input_size)  (batch_first=False)
    x = jax.random.normal(kx, (seq_len, batch, input_size), dtype=jnp.float32)

    params = init_slstm_params(key, input_size, hidden_size, num_layers)

    fwd = jax.jit(slstm_forward)
    out, (H, C, N, M) = fwd(x, params)
    out = jax.block_until_ready(out)

    # correctness check against pure-f32 JAX reference.
    # Tolerance accounts for bf16 recurrent weights + approx reciprocal.
    out_ref, (H_ref, C_ref, N_ref, M_ref) = slstm_forward_ref(x, params)
    assert out.shape == (seq_len, batch, hidden_size)
    assert H.shape == (num_layers, seq_len, batch, hidden_size)
    for a, b in ((out, out_ref), (H, H_ref), (C, C_ref), (N, N_ref), (M, M_ref)):
        assert jnp.allclose(a, b, atol=5e-2, rtol=5e-2), "mismatch vs reference"

    print("KERNEL_OK")
</pallas_src>

<mosaic_0001>
module attributes {stable_mosaic.version = 11 : i64} {
  func.func @_slstm_layer_kernel(%arg0: i32, %arg1: i32, %arg2: memref<8x8x512xf32, #tpu.memory_space<vmem>>, %arg3: memref<128x512xbf16, #tpu.memory_space<vmem>>, %arg4: memref<8x8x128xf32, #tpu.memory_space<vmem>>, %arg5: memref<8x8x128xf32, #tpu.memory_space<vmem>>, %arg6: memref<8x8x128xf32, #tpu.memory_space<vmem>>, %arg7: memref<8x128xf32, #tpu.memory_space<vmem>>, %arg8: memref<8x128xf32, #tpu.memory_space<vmem>>, %arg9: memref<8x128xf32, #tpu.memory_space<vmem>>, %arg10: memref<8x128xf32, #tpu.memory_space<vmem>>) attributes {dimension_semantics = [#tpu.dimension_semantics<parallel>, #tpu.dimension_semantics<arbitrary>], iteration_bounds = array<i64: 1, 1>, scalar_prefetch = 0 : i64, scratch_operands = 4 : i64, tpu.core_type = #tpu.core_type<tc>, window_params = [{transform_indices = @transform_0, window_bounds = array<i64: 8, 8, 512>}, {pipeline_mode = #tpu.pipeline_mode<synchronous>, transform_indices = @transform_1, window_bounds = array<i64: 128, 512>}, {transform_indices = @transform_2, window_bounds = array<i64: 8, 8, 128>}, {transform_indices = @transform_3, window_bounds = array<i64: 8, 8, 128>}, {transform_indices = @transform_4, window_bounds = array<i64: 8, 8, 128>}]} {
    %c0_i32 = arith.constant 0 : i32
    %0 = arith.cmpi eq, %arg1, %c0_i32 : i32
    %1 = arith.extui %0 : i1 to i32
    %c0_i32_0 = arith.constant 0 : i32
    %2 = arith.cmpi ne, %1, %c0_i32_0 : i32
    scf.if %2 {
      %cst_122 = arith.constant 0.000000e+00 : f32
      %436 = vector.broadcast %cst_122 : f32 to vector<8x128xf32>
      %c0_123 = arith.constant 0 : index
      %c0_124 = arith.constant 0 : index
      %437 = vector.load %arg7[%c0_123, %c0_124] : memref<8x128xf32, #tpu.memory_space<vmem>>, vector<8x128xf32>
      tpu.vector_store %arg7[%c0_123, %c0_124], %436 {strides = array<i32>} : memref<8x128xf32, #tpu.memory_space<vmem>>, vector<8x128xf32>,
      %cst_125 = arith.constant 0.000000e+00 : f32
      %438 = vector.broadcast %cst_125 : f32 to vector<8x128xf32>
      %c0_126 = arith.constant 0 : index
      %c0_127 = arith.constant 0 : index
      %439 = vector.load %arg8[%c0_126, %c0_127] : memref<8x128xf32, #tpu.memory_space<vmem>>, vector<8x128xf32>
      tpu.vector_store %arg8[%c0_126, %c0_127], %438 {strides = array<i32>} : memref<8x128xf32, #tpu.memory_space<vmem>>, vector<8x128xf32>,
      %cst_128 = arith.constant 0.000000e+00 : f32
      %440 = vector.broadcast %cst_128 : f32 to vector<8x128xf32>
      %c0_129 = arith.constant 0 : index
      %c0_130 = arith.constant 0 : index
      %441 = vector.load %arg9[%c0_129, %c0_130] : memref<8x128xf32, #tpu.memory_space<vmem>>, vector<8x128xf32>
      tpu.vector_store %arg9[%c0_129, %c0_130], %440 {strides = array<i32>} : memref<8x128xf32, #tpu.memory_space<vmem>>, vector<8x128xf32>,
      %cst_131 = arith.constant 0.000000e+00 : f32
      %442 = vector.broadcast %cst_131 : f32 to vector<8x128xf32>
      %c0_132 = arith.constant 0 : index
      %c0_133 = arith.constant 0 : index
      %443 = vector.load %arg10[%c0_132, %c0_133] : memref<8x128xf32, #tpu.memory_space<vmem>>, vector<8x128xf32>
      tpu.vector_store %arg10[%c0_132, %c0_133], %442 {strides = array<i32>} : memref<8x128xf32, #tpu.memory_space<vmem>>, vector<8x128xf32>,
    } else {
    }
    %c0 = arith.constant 0 : index
    %c0_1 = arith.constant 0 : index
    %3 = vector.load %arg3[%c0, %c0_1] : memref<128x512xbf16, #tpu.memory_space<vmem>>, vector<128x512xbf16>
    %c0_2 = arith.constant 0 : index
    %c0_3 = arith.constant 0 : index
    %4 = vector.load %arg7[%c0_2, %c0_3] : memref<8x128xf32, #tpu.memory_space<vmem>>, vector<8x128xf32>
    %c0_4 = arith.constant 0 : index
    %c0_5 = arith.constant 0 : index
    %5 = vector.load %arg8[%c0_4, %c0_5] : memref<8x128xf32, #tpu.memory_space<vmem>>, vector<8x128xf32>
    %c0_6 = arith.constant 0 : index
    %c0_7 = arith.constant 0 : index
    %6 = vector.load %arg9[%c0_6, %c0_7] : memref<8x128xf32, #tpu.memory_space<vmem>>, vector<8x128xf32>
    %c0_8 = arith.constant 0 : index
    %c0_9 = arith.constant 0 : index
    %7 = vector.load %arg10[%c0_8, %c0_9] : memref<8x128xf32, #tpu.memory_space<vmem>>, vector<8x128xf32>
    %c0_i32_10 = arith.constant 0 : i32
    %8 = arith.index_cast %c0_i32_10 : i32 to index
    %c0_11 = arith.constant 0 : index
    %c0_12 = arith.constant 0 : index
    %9 = vector.load %arg2[%8, %c0_11, %c0_12] : memref<8x8x512xf32, #tpu.memory_space<vmem>>, vector<1x8x512xf32>
    %10 = vector.shape_cast %9 : vector<1x8x512xf32> to vector<8x512xf32>
    %11 = arith.truncf %4 : vector<8x128xf32> to vector<8x128xbf16>
    %cst = arith.constant dense<0.000000e+00> : vector<8x512xf32>
    %12 = tpu.matmul %11, %3, %cst {dimension_numbers = #tpu.dot_dimension_numbers<[1], [0], [0], [1], [0, 0, 1, 1], [], []>} : vector<8x128xbf16>, vector<128x512xbf16>, vector<8x512xf32> -> vector<8x512xf32>
    %13 = arith.addf %10, %12 : vector<8x512xf32>
    %14 = vector.extract_strided_slice %13 {offsets = [0, 0], sizes = [8, 128], strides = [1, 1]} : vector<8x512xf32> to vector<8x128xf32>
    %15 = vector.extract_strided_slice %13 {offsets = [0, 128], sizes = [8, 128], strides = [1, 1]} : vector<8x512xf32> to vector<8x128xf32>
    %16 = vector.extract_strided_slice %13 {offsets = [0, 256], sizes = [8, 128], strides = [1, 1]} : vector<8x512xf32> to vector<8x128xf32>
    %17 = vector.extract_strided_slice %13 {offsets = [0, 384], sizes = [8, 128], strides = [1, 1]} : vector<8x512xf32> to vector<8x128xf32>
    %18 = math.tanh %14 : vector<8x128xf32>
    %19 = arith.negf %16 : vector<8x128xf32>
    %20 = math.exp %19 : vector<8x128xf32>
    %cst_13 = arith.constant 1.000000e+00 : f32
    %21 = vector.broadcast %cst_13 : f32 to vector<8x128xf32>
    %22 = arith.addf %21, %20 : vector<8x128xf32>
    %23 = arith.divf %21, %22 : vector<8x128xf32>
    %24 = arith.negf %17 : vector<8x128xf32>
    %25 = math.exp %24 : vector<8x128xf32>
    %cst_14 = arith.constant 1.000000e+00 : f32
    %26 = vector.broadcast %cst_14 : f32 to vector<8x128xf32>
    %27 = arith.addf %26, %25 : vector<8x128xf32>
    %28 = arith.divf %26, %27 : vector<8x128xf32>
    %cst_15 = arith.constant 0.000000e+00 : f32
    %29 = vector.broadcast %cst_15 : f32 to vector<8x128xf32>
    %30 = arith.minimumf %16, %29 : vector<8x128xf32>
    %31 = math.absf %16 : vector<8x128xf32>
    %cst_16 = arith.constant 0.000000e+00 : f32
    %32 = vector.broadcast %cst_16 : f32 to vector<8x128xf32>
    %33 = arith.subf %32, %31 : vector<8x128xf32>
    %34 = math.exp %33 : vector<8x128xf32>
    %35 = math.log1p %34 : vector<8x128xf32>
    %36 = arith.subf %30, %35 : vector<8x128xf32>
    %37 = arith.addf %36, %7 : vector<8x128xf32>
    %38 = arith.maximumf %37, %15 : vector<8x128xf32>
    %39 = arith.subf %15, %38 : vector<8x128xf32>
    %40 = math.exp %39 : vector<8x128xf32>
    %41 = arith.mulf %23, %5 : vector<8x128xf32>
    %42 = arith.mulf %40, %18 : vector<8x128xf32>
    %43 = arith.addf %41, %42 : vector<8x128xf32>
    %44 = arith.mulf %23, %6 : vector<8x128xf32>
    %45 = arith.addf %44, %40 : vector<8x128xf32>
    %46 = arith.mulf %28, %43 : vector<8x128xf32>
    %47 = tpu.reciprocal %45 {approx = true} : vector<8x128xf32> -> vector<8x128xf32>
    %48 = arith.mulf %46, %47 : vector<8x128xf32>
    %49 = arith.index_cast %c0_i32_10 : i32 to index
    %c0_17 = arith.constant 0 : index
    %c0_18 = arith.constant 0 : index
    %50 = vector.load %arg4[%49, %c0_17, %c0_18] : memref<8x8x128xf32, #tpu.memory_space<vmem>>, vector<1x8x128xf32>
    %51 = vector.shape_cast %50 : vector<1x8x128xf32> to vector<8x128xf32>
    %52 = vector.shape_cast %48 : vector<8x128xf32> to vector<1x8x128xf32>
    tpu.vector_store %arg4[%49, %c0_17, %c0_18], %52 {strides = array<i32>} : memref<8x8x128xf32, #tpu.memory_space<vmem>>, vector<1x8x128xf32>,
    %53 = arith.index_cast %c0_i32_10 : i32 to index
    %c0_19 = arith.constant 0 : index
    %c0_20 = arith.constant 0 : index
    %54 = vector.load %arg5[%53, %c0_19, %c0_20] : memref<8x8x128xf32, #tpu.memory_space<vmem>>, vector<1x8x128xf32>
    %55 = vector.shape_cast %54 : vector<1x8x128xf32> to vector<8x128xf32>
    %56 = vector.shape_cast %43 : vector<8x128xf32> to vector<1x8x128xf32>
    tpu.vector_store %arg5[%53, %c0_19, %c0_20], %56 {strides = array<i32>} : memref<8x8x128xf32, #tpu.memory_space<vmem>>, vector<1x8x128xf32>,
    %57 = arith.index_cast %c0_i32_10 : i32 to index
    %c0_21 = arith.constant 0 : index
    %c0_22 = arith.constant 0 : index
    %58 = vector.load %arg6[%57, %c0_21, %c0_22] : memref<8x8x128xf32, #tpu.memory_space<vmem>>, vector<1x8x128xf32>
    %59 = vector.shape_cast %58 : vector<1x8x128xf32> to vector<8x128xf32>
    %60 = vector.shape_cast %45 : vector<8x128xf32> to vector<1x8x128xf32>
    tpu.vector_store %arg6[%57, %c0_21, %c0_22], %60 {strides = array<i32>} : memref<8x8x128xf32, #tpu.memory_space<vmem>>, vector<1x8x128xf32>,
    %c1_i32 = arith.constant 1 : i32
    %61 = arith.index_cast %c1_i32 : i32 to index
    %c0_23 = arith.constant 0 : index
    %c0_24 = arith.constant 0 : index
    %62 = vector.load %arg2[%61, %c0_23, %c0_24] : memref<8x8x512xf32, #tpu.memory_space<vmem>>, vector<1x8x512xf32>
    %63 = vector.shape_cast %62 : vector<1x8x512xf32> to vector<8x512xf32>
    %64 = arith.truncf %48 : vector<8x128xf32> to vector<8x128xbf16>
    %cst_25 = arith.constant dense<0.000000e+00> : vector<8x512xf32>
    %65 = tpu.matmul %64, %3, %cst_25 {dimension_numbers = #tpu.dot_dimension_numbers<[1], [0], [0], [1], [0, 0, 1, 1], [], []>} : vector<8x128xbf16>, vector<128x512xbf16>, vector<8x512xf32> -> vector<8x512xf32>
    %66 = arith.addf %63, %65 : vector<8x512xf32>
    %67 = vector.extract_strided_slice %66 {offsets = [0, 0], sizes = [8, 128], strides = [1, 1]} : vector<8x512xf32> to vector<8x128xf32>
    %68 = vector.extract_strided_slice %66 {offsets = [0, 128], sizes = [8, 128], strides = [1, 1]} : vector<8x512xf32> to vector<8x128xf32>
    %69 = vector.extract_strided_slice %66 {offsets = [0, 256], sizes = [8, 128], strides = [1, 1]} : vector<8x512xf32> to vector<8x128xf32>
    %70 = vector.extract_strided_slice %66 {offsets = [0, 384], sizes = [8, 128], strides = [1, 1]} : vector<8x512xf32> to vector<8x128xf32>
    %71 = math.tanh %67 : vector<8x128xf32>
    %72 = arith.negf %69 : vector<8x128xf32>
    %73 = math.exp %72 : vector<8x128xf32>
    %cst_26 = arith.constant 1.000000e+00 : f32
    %74 = vector.broadcast %cst_26 : f32 to vector<8x128xf32>
    %75 = arith.addf %74, %73 : vector<8x128xf32>
    %76 = arith.divf %74, %75 : vector<8x128xf32>
    %77 = arith.negf %70 : vector<8x128xf32>
    %78 = math.exp %77 : vector<8x128xf32>
    %cst_27 = arith.constant 1.000000e+00 : f32
    %79 = vector.broadcast %cst_27 : f32 to vector<8x128xf32>
    %80 = arith.addf %79, %78 : vector<8x128xf32>
    %81 = arith.divf %79, %80 : vector<8x128xf32>
    %cst_28 = arith.constant 0.000000e+00 : f32
    %82 = vector.broadcast %cst_28 : f32 to vector<8x128xf32>
    %83 = arith.minimumf %69, %82 : vector<8x128xf32>
    %84 = math.absf %69 : vector<8x128xf32>
    %cst_29 = arith.constant 0.000000e+00 : f32
    %85 = vector.broadcast %cst_29 : f32 to vector<8x128xf32>
    %86 = arith.subf %85, %84 : vector<8x128xf32>
    %87 = math.exp %86 : vector<8x128xf32>
    %88 = math.log1p %87 : vector<8x128xf32>
    %89 = arith.subf %83, %88 : vector<8x128xf32>
    %90 = arith.addf %89, %38 : vector<8x128xf32>
    %91 = arith.maximumf %90, %68 : vector<8x128xf32>
    %92 = arith.subf %68, %91 : vector<8x128xf32>
    %93 = math.exp %92 : vector<8x128xf32>
    %94 = arith.mulf %76, %43 : vector<8x128xf32>
    %95 = arith.mulf %93, %71 : vector<8x128xf32>
    %96 = arith.addf %94, %95 : vector<8x128xf32>
    %97 = arith.mulf %76, %45 : vector<8x128xf32>
    %98 = arith.addf %97, %93 : vector<8x128xf32>
    %99 = arith.mulf %81, %96 : vector<8x128xf32>
    %100 = tpu.reciprocal %98 {approx = true} : vector<8x128xf32> -> vector<8x128xf32>
    %101 = arith.mulf %99, %100 : vector<8x128xf32>
    %102 = arith.index_cast %c1_i32 : i32 to index
    %c0_30 = arith.constant 0 : index
    %c0_31 = arith.constant 0 : index
    %103 = vector.load %arg4[%102, %c0_30, %c0_31] : memref<8x8x128xf32, #tpu.memory_space<vmem>>, vector<1x8x128xf32>
    %104 = vector.shape_cast %103 : vector<1x8x128xf32> to vector<8x128xf32>
    %105 = vector.shape_cast %101 : vector<8x128xf32> to vector<1x8x128xf32>
    tpu.vector_store %arg4[%102, %c0_30, %c0_31], %105 {strides = array<i32>} : memref<8x8x128xf32, #tpu.memory_space<vmem>>, vector<1x8x128xf32>,
    %106 = arith.index_cast %c1_i32 : i32 to index
    %c0_32 = arith.constant 0 : index
    %c0_33 = arith.constant 0 : index
    %107 = vector.load %arg5[%106, %c0_32, %c0_33] : memref<8x8x128xf32, #tpu.memory_space<vmem>>, vector<1x8x128xf32>
    %108 = vector.shape_cast %107 : vector<1x8x128xf32> to vector<8x128xf32>
    %109 = vector.shape_cast %96 : vector<8x128xf32> to vector<1x8x128xf32>
    tpu.vector_store %arg5[%106, %c0_32, %c0_33], %109 {strides = array<i32>} : memref<8x8x128xf32, #tpu.memory_space<vmem>>, vector<1x8x128xf32>,
    %110 = arith.index_cast %c1_i32 : i32 to index
    %c0_34 = arith.constant 0 : index
    %c0_35 = arith.constant 0 : index
    %111 = vector.load %arg6[%110, %c0_34, %c0_35] : memref<8x8x128xf32, #tpu.memory_space<vmem>>, vector<1x8x128xf32>
    %112 = vector.shape_cast %111 : vector<1x8x128xf32> to vector<8x128xf32>
    %113 = vector.shape_cast %98 : vector<8x128xf32> to vector<1x8x128xf32>
    tpu.vector_store %arg6[%110, %c0_34, %c0_35], %113 {strides = array<i32>} : memref<8x8x128xf32, #tpu.memory_space<vmem>>, vector<1x8x128xf32>,
    %c2_i32 = arith.constant 2 : i32
    %114 = arith.index_cast %c2_i32 : i32 to index
    %c0_36 = arith.constant 0 : index
    %c0_37 = arith.constant 0 : index
    %115 = vector.load %arg2[%114, %c0_36, %c0_37] : memref<8x8x512xf32, #tpu.memory_space<vmem>>, vector<1x8x512xf32>
    %116 = vector.shape_cast %115 : vector<1x8x512xf32> to vector<8x512xf32>
    %117 = arith.truncf %101 : vector<8x128xf32> to vector<8x128xbf16>
    %cst_38 = arith.constant dense<0.000000e+00> : vector<8x512xf32>
    %118 = tpu.matmul %117, %3, %cst_38 {dimension_numbers = #tpu.dot_dimension_numbers<[1], [0], [0], [1], [0, 0, 1, 1], [], []>} : vector<8x128xbf16>, vector<128x512xbf16>, vector<8x512xf32> -> vector<8x512xf32>
    %119 = arith.addf %116, %118 : vector<8x512xf32>
    %120 = vector.extract_strided_slice %119 {offsets = [0, 0], sizes = [8, 128], strides = [1, 1]} : vector<8x512xf32> to vector<8x128xf32>
    %121 = vector.extract_strided_slice %119 {offsets = [0, 128], sizes = [8, 128], strides = [1, 1]} : vector<8x512xf32> to vector<8x128xf32>
    %122 = vector.extract_strided_slice %119 {offsets = [0, 256], sizes = [8, 128], strides = [1, 1]} : vector<8x512xf32> to vector<8x128xf32>
    %123 = vector.extract_strided_slice %119 {offsets = [0, 384], sizes = [8, 128], strides = [1, 1]} : vector<8x512xf32> to vector<8x128xf32>
    %124 = math.tanh %120 : vector<8x128xf32>
    %125 = arith.negf %122 : vector<8x128xf32>
    %126 = math.exp %125 : vector<8x128xf32>
    %cst_39 = arith.constant 1.000000e+00 : f32
    %127 = vector.broadcast %cst_39 : f32 to vector<8x128xf32>
    %128 = arith.addf %127, %126 : vector<8x128xf32>
    %129 = arith.divf %127, %128 : vector<8x128xf32>
    %130 = arith.negf %123 : vector<8x128xf32>
    %131 = math.exp %130 : vector<8x128xf32>
    %cst_40 = arith.constant 1.000000e+00 : f32
    %132 = vector.broadcast %cst_40 : f32 to vector<8x128xf32>
    %133 = arith.addf %132, %131 : vector<8x128xf32>
    %134 = arith.divf %132, %133 : vector<8x128xf32>
    %cst_41 = arith.constant 0.000000e+00 : f32
    %135 = vector.broadcast %cst_41 : f32 to vector<8x128xf32>
    %136 = arith.minimumf %122, %135 : vector<8x128xf32>
    %137 = math.absf %122 : vector<8x128xf32>
    %cst_42 = arith.constant 0.000000e+00 : f32
    %138 = vector.broadcast %cst_42 : f32 to vector<8x128xf32>
    %139 = arith.subf %138, %137 : vector<8x128xf32>
    %140 = math.exp %139 : vector<8x128xf32>
    %141 = math.log1p %140 : vector<8x128xf32>
    %142 = arith.subf %136, %141 : vector<8x128xf32>
    %143 = arith.addf %142, %91 : vector<8x128xf32>
    %144 = arith.maximumf %143, %121 : vector<8x128xf32>
    %145 = arith.subf %121, %144 : vector<8x128xf32>
    %146 = math.exp %145 : vector<8x128xf32>
    %147 = arith.mulf %129, %96 : vector<8x128xf32>
    %148 = arith.mulf %146, %124 : vector<8x128xf32>
    %149 = arith.addf %147, %148 : vector<8x128xf32>
    %150 = arith.mulf %129, %98 : vector<8x128xf32>
    %151 = arith.addf %150, %146 : vector<8x128xf32>
    %152 = arith.mulf %134, %149 : vector<8x128xf32>
    %153 = tpu.reciprocal %151 {approx = true} : vector<8x128xf32> -> vector<8x128xf32>
    %154 = arith.mulf %152, %153 : vector<8x128xf32>
    %155 = arith.index_cast %c2_i32 : i32 to index
    %c0_43 = arith.constant 0 : index
    %c0_44 = arith.constant 0 : index
    %156 = vector.load %arg4[%155, %c0_43, %c0_44] : memref<8x8x128xf32, #tpu.memory_space<vmem>>, vector<1x8x128xf32>
    %157 = vector.shape_cast %156 : vector<1x8x128xf32> to vector<8x128xf32>
    %158 = vector.shape_cast %154 : vector<8x128xf32> to vector<1x8x128xf32>
    tpu.vector_store %arg4[%155, %c0_43, %c0_44], %158 {strides = array<i32>} : memref<8x8x128xf32, #tpu.memory_space<vmem>>, vector<1x8x128xf32>,
    %159 = arith.index_cast %c2_i32 : i32 to index
    %c0_45 = arith.constant 0 : index
    %c0_46 = arith.constant 0 : index
    %160 = vector.load %arg5[%159, %c0_45, %c0_46] : memref<8x8x128xf32, #tpu.memory_space<vmem>>, vector<1x8x128xf32>
    %161 = vector.shape_cast %160 : vector<1x8x128xf32> to vector<8x128xf32>
    %162 = vector.shape_cast %149 : vector<8x128xf32> to vector<1x8x128xf32>
    tpu.vector_store %arg5[%159, %c0_45, %c0_46], %162 {strides = array<i32>} : memref<8x8x128xf32, #tpu.memory_space<vmem>>, vector<1x8x128xf32>,
    %163 = arith.index_cast %c2_i32 : i32 to index
    %c0_47 = arith.constant 0 : index
    %c0_48 = arith.constant 0 : index
    %164 = vector.load %arg6[%163, %c0_47, %c0_48] : memref<8x8x128xf32, #tpu.memory_space<vmem>>, vector<1x8x128xf32>
    %165 = vector.shape_cast %164 : vector<1x8x128xf32> to vector<8x128xf32>
    %166 = vector.shape_cast %151 : vector<8x128xf32> to vector<1x8x128xf32>
    tpu.vector_store %arg6[%163, %c0_47, %c0_48], %166 {strides = array<i32>} : memref<8x8x128xf32, #tpu.memory_space<vmem>>, vector<1x8x128xf32>,
    %c3_i32 = arith.constant 3 : i32
    %167 = arith.index_cast %c3_i32 : i32 to index
    %c0_49 = arith.constant 0 : index
    %c0_50 = arith.constant 0 : index
    %168 = vector.load %arg2[%167, %c0_49, %c0_50] : memref<8x8x512xf32, #tpu.memory_space<vmem>>, vector<1x8x512xf32>
    %169 = vector.shape_cast %168 : vector<1x8x512xf32> to vector<8x512xf32>
    %170 = arith.truncf %154 : vector<8x128xf32> to vector<8x128xbf16>
    %cst_51 = arith.constant dense<0.000000e+00> : vector<8x512xf32>
    %171 = tpu.matmul %170, %3, %cst_51 {dimension_numbers = #tpu.dot_dimension_numbers<[1], [0], [0], [1], [0, 0, 1, 1], [], []>} : vector<8x128xbf16>, vector<128x512xbf16>, vector<8x512xf32> -> vector<8x512xf32>
    %172 = arith.addf %169, %171 : vector<8x512xf32>
    %173 = vector.extract_strided_slice %172 {offsets = [0, 0], sizes = [8, 128], strides = [1, 1]} : vector<8x512xf32> to vector<8x128xf32>
    %174 = vector.extract_strided_slice %172 {offsets = [0, 128], sizes = [8, 128], strides = [1, 1]} : vector<8x512xf32> to vector<8x128xf32>
    %175 = vector.extract_strided_slice %172 {offsets = [0, 256], sizes = [8, 128], strides = [1, 1]} : vector<8x512xf32> to vector<8x128xf32>
    %176 = vector.extract_strided_slice %172 {offsets = [0, 384], sizes = [8, 128], strides = [1, 1]} : vector<8x512xf32> to vector<8x128xf32>
    %177 = math.tanh %173 : vector<8x128xf32>
    %178 = arith.negf %175 : vector<8x128xf32>
    %179 = math.exp %178 : vector<8x128xf32>
    %cst_52 = arith.constant 1.000000e+00 : f32
    %180 = vector.broadcast %cst_52 : f32 to vector<8x128xf32>
    %181 = arith.addf %180, %179 : vector<8x128xf32>
    %182 = arith.divf %180, %181 : vector<8x128xf32>
    %183 = arith.negf %176 : vector<8x128xf32>
    %184 = math.exp %183 : vector<8x128xf32>
    %cst_53 = arith.constant 1.000000e+00 : f32
    %185 = vector.broadcast %cst_53 : f32 to vector<8x128xf32>
    %186 = arith.addf %185, %184 : vector<8x128xf32>
    %187 = arith.divf %185, %186 : vector<8x128xf32>
    %cst_54 = arith.constant 0.000000e+00 : f32
    %188 = vector.broadcast %cst_54 : f32 to vector<8x128xf32>
    %189 = arith.minimumf %175, %188 : vector<8x128xf32>
    %190 = math.absf %175 : vector<8x128xf32>
    %cst_55 = arith.constant 0.000000e+00 : f32
    %191 = vector.broadcast %cst_55 : f32 to vector<8x128xf32>
    %192 = arith.subf %191, %190 : vector<8x128xf32>
    %193 = math.exp %192 : vector<8x128xf32>
    %194 = math.log1p %193 : vector<8x128xf32>
    %195 = arith.subf %189, %194 : vector<8x128xf32>
    %196 = arith.addf %195, %144 : vector<8x128xf32>
    %197 = arith.maximumf %196, %174 : vector<8x128xf32>
    %198 = arith.subf %174, %197 : vector<8x128xf32>
    %199 = math.exp %198 : vector<8x128xf32>
    %200 = arith.mulf %182, %149 : vector<8x128xf32>
    %201 = arith.mulf %199, %177 : vector<8x128xf32>
    %202 = arith.addf %200, %201 : vector<8x128xf32>
    %203 = arith.mulf %182, %151 : vector<8x128xf32>
    %204 = arith.addf %203, %199 : vector<8x128xf32>
    %205 = arith.mulf %187, %202 : vector<8x128xf32>
    %206 = tpu.reciprocal %204 {approx = true} : vector<8x128xf32> -> vector<8x128xf32>
    %207 = arith.mulf %205, %206 : vector<8x128xf32>
    %208 = arith.index_cast %c3_i32 : i32 to index
    %c0_56 = arith.constant 0 : index
    %c0_57 = arith.constant 0 : index
    %209 = vector.load %arg4[%208, %c0_56, %c0_57] : memref<8x8x128xf32, #tpu.memory_space<vmem>>, vector<1x8x128xf32>
    %210 = vector.shape_cast %209 : vector<1x8x128xf32> to vector<8x128xf32>
    %211 = vector.shape_cast %207 : vector<8x128xf32> to vector<1x8x128xf32>
    tpu.vector_store %arg4[%208, %c0_56, %c0_57], %211 {strides = array<i32>} : memref<8x8x128xf32, #tpu.memory_space<vmem>>, vector<1x8x128xf32>,
    %212 = arith.index_cast %c3_i32 : i32 to index
    %c0_58 = arith.constant 0 : index
    %c0_59 = arith.constant 0 : index
    %213 = vector.load %arg5[%212, %c0_58, %c0_59] : memref<8x8x128xf32, #tpu.memory_space<vmem>>, vector<1x8x128xf32>
    %214 = vector.shape_cast %213 : vector<1x8x128xf32> to vector<8x128xf32>
    %215 = vector.shape_cast %202 : vector<8x128xf32> to vector<1x8x128xf32>
    tpu.vector_store %arg5[%212, %c0_58, %c0_59], %215 {strides = array<i32>} : memref<8x8x128xf32, #tpu.memory_space<vmem>>, vector<1x8x128xf32>,
    %216 = arith.index_cast %c3_i32 : i32 to index
    %c0_60 = arith.constant 0 : index
    %c0_61 = arith.constant 0 : index
    %217 = vector.load %arg6[%216, %c0_60, %c0_61] : memref<8x8x128xf32, #tpu.memory_space<vmem>>, vector<1x8x128xf32>
    %218 = vector.shape_cast %217 : vector<1x8x128xf32> to vector<8x128xf32>
    %219 = vector.shape_cast %204 : vector<8x128xf32> to vector<1x8x128xf32>
    tpu.vector_store %arg6[%216, %c0_60, %c0_61], %219 {strides = array<i32>} : memref<8x8x128xf32, #tpu.memory_space<vmem>>, vector<1x8x128xf32>,
    %c4_i32 = arith.constant 4 : i32
    %220 = arith.index_cast %c4_i32 : i32 to index
    %c0_62 = arith.constant 0 : index
    %c0_63 = arith.constant 0 : index
    %221 = vector.load %arg2[%220, %c0_62, %c0_63] : memref<8x8x512xf32, #tpu.memory_space<vmem>>, vector<1x8x512xf32>
    %222 = vector.shape_cast %221 : vector<1x8x512xf32> to vector<8x512xf32>
    %223 = arith.truncf %207 : vector<8x128xf32> to vector<8x128xbf16>
    %cst_64 = arith.constant dense<0.000000e+00> : vector<8x512xf32>
    %224 = tpu.matmul %223, %3, %cst_64 {dimension_numbers = #tpu.dot_dimension_numbers<[1], [0], [0], [1], [0, 0, 1, 1], [], []>} : vector<8x128xbf16>, vector<128x512xbf16>, vector<8x512xf32> -> vector<8x512xf32>
    %225 = arith.addf %222, %224 : vector<8x512xf32>
    %226 = vector.extract_strided_slice %225 {offsets = [0, 0], sizes = [8, 128], strides = [1, 1]} : vector<8x512xf32> to vector<8x128xf32>
    %227 = vector.extract_strided_slice %225 {offsets = [0, 128], sizes = [8, 128], strides = [1, 1]} : vector<8x512xf32> to vector<8x128xf32>
    %228 = vector.extract_strided_slice %225 {offsets = [0, 256], sizes = [8, 128], strides = [1, 1]} : vector<8x512xf32> to vector<8x128xf32>
    %229 = vector.extract_strided_slice %225 {offsets = [0, 384], sizes = [8, 128], strides = [1, 1]} : vector<8x512xf32> to vector<8x128xf32>
    %230 = math.tanh %226 : vector<8x128xf32>
    %231 = arith.negf %228 : vector<8x128xf32>
    %232 = math.exp %231 : vector<8x128xf32>
    %cst_65 = arith.constant 1.000000e+00 : f32
    %233 = vector.broadcast %cst_65 : f32 to vector<8x128xf32>
    %234 = arith.addf %233, %232 : vector<8x128xf32>
    %235 = arith.divf %233, %234 : vector<8x128xf32>
    %236 = arith.negf %229 : vector<8x128xf32>
    %237 = math.exp %236 : vector<8x128xf32>
    %cst_66 = arith.constant 1.000000e+00 : f32
    %238 = vector.broadcast %cst_66 : f32 to vector<8x128xf32>
    %239 = arith.addf %238, %237 : vector<8x128xf32>
    %240 = arith.divf %238, %239 : vector<8x128xf32>
    %cst_67 = arith.constant 0.000000e+00 : f32
    %241 = vector.broadcast %cst_67 : f32 to vector<8x128xf32>
    %242 = arith.minimumf %228, %241 : vector<8x128xf32>
    %243 = math.absf %228 : vector<8x128xf32>
    %cst_68 = arith.constant 0.000000e+00 : f32
    %244 = vector.broadcast %cst_68 : f32 to vector<8x128xf32>
    %245 = arith.subf %244, %243 : vector<8x128xf32>
    %246 = math.exp %245 : vector<8x128xf32>
    %247 = math.log1p %246 : vector<8x128xf32>
    %248 = arith.subf %242, %247 : vector<8x128xf32>
    %249 = arith.addf %248, %197 : vector<8x128xf32>
    %250 = arith.maximumf %249, %227 : vector<8x128xf32>
    %251 = arith.subf %227, %250 : vector<8x128xf32>
    %252 = math.exp %251 : vector<8x128xf32>
    %253 = arith.mulf %235, %202 : vector<8x128xf32>
    %254 = arith.mulf %252, %230 : vector<8x128xf32>
    %255 = arith.addf %253, %254 : vector<8x128xf32>
    %256 = arith.mulf %235, %204 : vector<8x128xf32>
    %257 = arith.addf %256, %252 : vector<8x128xf32>
    %258 = arith.mulf %240, %255 : vector<8x128xf32>
    %259 = tpu.reciprocal %257 {approx = true} : vector<8x128xf32> -> vector<8x128xf32>
    %260 = arith.mulf %258, %259 : vector<8x128xf32>
    %261 = arith.index_cast %c4_i32 : i32 to index
    %c0_69 = arith.constant 0 : index
    %c0_70 = arith.constant 0 : index
    %262 = vector.load %arg4[%261, %c0_69, %c0_70] : memref<8x8x128xf32, #tpu.memory_space<vmem>>, vector<1x8x128xf32>
    %263 = vector.shape_cast %262 : vector<1x8x128xf32> to vector<8x128xf32>
    %264 = vector.shape_cast %260 : vector<8x128xf32> to vector<1x8x128xf32>
    tpu.vector_store %arg4[%261, %c0_69, %c0_70], %264 {strides = array<i32>} : memref<8x8x128xf32, #tpu.memory_space<vmem>>, vector<1x8x128xf32>,
    %265 = arith.index_cast %c4_i32 : i32 to index
    %c0_71 = arith.constant 0 : index
    %c0_72 = arith.constant 0 : index
    %266 = vector.load %arg5[%265, %c0_71, %c0_72] : memref<8x8x128xf32, #tpu.memory_space<vmem>>, vector<1x8x128xf32>
    %267 = vector.shape_cast %266 : vector<1x8x128xf32> to vector<8x128xf32>
    %268 = vector.shape_cast %255 : vector<8x128xf32> to vector<1x8x128xf32>
    tpu.vector_store %arg5[%265, %c0_71, %c0_72], %268 {strides = array<i32>} : memref<8x8x128xf32, #tpu.memory_space<vmem>>, vector<1x8x128xf32>,
    %269 = arith.index_cast %c4_i32 : i32 to index
    %c0_73 = arith.constant 0 : index
    %c0_74 = arith.constant 0 : index
    %270 = vector.load %arg6[%269, %c0_73, %c0_74] : memref<8x8x128xf32, #tpu.memory_space<vmem>>, vector<1x8x128xf32>
    %271 = vector.shape_cast %270 : vector<1x8x128xf32> to vector<8x128xf32>
    %272 = vector.shape_cast %257 : vector<8x128xf32> to vector<1x8x128xf32>
    tpu.vector_store %arg6[%269, %c0_73, %c0_74], %272 {strides = array<i32>} : memref<8x8x128xf32, #tpu.memory_space<vmem>>, vector<1x8x128xf32>,
    %c5_i32 = arith.constant 5 : i32
    %273 = arith.index_cast %c5_i32 : i32 to index
    %c0_75 = arith.constant 0 : index
    %c0_76 = arith.constant 0 : index
    %274 = vector.load %arg2[%273, %c0_75, %c0_76] : memref<8x8x512xf32, #tpu.memory_space<vmem>>, vector<1x8x512xf32>
    %275 = vector.shape_cast %274 : vector<1x8x512xf32> to vector<8x512xf32>
    %276 = arith.truncf %260 : vector<8x128xf32> to vector<8x128xbf16>
    %cst_77 = arith.constant dense<0.000000e+00> : vector<8x512xf32>
    %277 = tpu.matmul %276, %3, %cst_77 {dimension_numbers = #tpu.dot_dimension_numbers<[1], [0], [0], [1], [0, 0, 1, 1], [], []>} : vector<8x128xbf16>, vector<128x512xbf16>, vector<8x512xf32> -> vector<8x512xf32>
    %278 = arith.addf %275, %277 : vector<8x512xf32>
    %279 = vector.extract_strided_slice %278 {offsets = [0, 0], sizes = [8, 128], strides = [1, 1]} : vector<8x512xf32> to vector<8x128xf32>
    %280 = vector.extract_strided_slice %278 {offsets = [0, 128], sizes = [8, 128], strides = [1, 1]} : vector<8x512xf32> to vector<8x128xf32>
    %281 = vector.extract_strided_slice %278 {offsets = [0, 256], sizes = [8, 128], strides = [1, 1]} : vector<8x512xf32> to vector<8x128xf32>
    %282 = vector.extract_strided_slice %278 {offsets = [0, 384], sizes = [8, 128], strides = [1, 1]} : vector<8x512xf32> to vector<8x128xf32>
    %283 = math.tanh %279 : vector<8x128xf32>
    %284 = arith.negf %281 : vector<8x128xf32>
    %285 = math.exp %284 : vector<8x128xf32>
    %cst_78 = arith.constant 1.000000e+00 : f32
    %286 = vector.broadcast %cst_78 : f32 to vector<8x128xf32>
    %287 = arith.addf %286, %285 : vector<8x128xf32>
    %288 = arith.divf %286, %287 : vector<8x128xf32>
    %289 = arith.negf %282 : vector<8x128xf32>
    %290 = math.exp %289 : vector<8x128xf32>
    %cst_79 = arith.constant 1.000000e+00 : f32
    %291 = vector.broadcast %cst_79 : f32 to vector<8x128xf32>
    %292 = arith.addf %291, %290 : vector<8x128xf32>
    %293 = arith.divf %291, %292 : vector<8x128xf32>
    %cst_80 = arith.constant 0.000000e+00 : f32
    %294 = vector.broadcast %cst_80 : f32 to vector<8x128xf32>
    %295 = arith.minimumf %281, %294 : vector<8x128xf32>
    %296 = math.absf %281 : vector<8x128xf32>
    %cst_81 = arith.constant 0.000000e+00 : f32
    %297 = vector.broadcast %cst_81 : f32 to vector<8x128xf32>
    %298 = arith.subf %297, %296 : vector<8x128xf32>
    %299 = math.exp %298 : vector<8x128xf32>
    %300 = math.log1p %299 : vector<8x128xf32>
    %301 = arith.subf %295, %300 : vector<8x128xf32>
    %302 = arith.addf %301, %250 : vector<8x128xf32>
    %303 = arith.maximumf %302, %280 : vector<8x128xf32>
    %304 = arith.subf %280, %303 : vector<8x128xf32>
    %305 = math.exp %304 : vector<8x128xf32>
    %306 = arith.mulf %288, %255 : vector<8x128xf32>
    %307 = arith.mulf %305, %283 : vector<8x128xf32>
    %308 = arith.addf %306, %307 : vector<8x128xf32>
    %309 = arith.mulf %288, %257 : vector<8x128xf32>
    %310 = arith.addf %309, %305 : vector<8x128xf32>
    %311 = arith.mulf %293, %308 : vector<8x128xf32>
    %312 = tpu.reciprocal %310 {approx = true} : vector<8x128xf32> -> vector<8x128xf32>
    %313 = arith.mulf %311, %312 : vector<8x128xf32>
    %314 = arith.index_cast %c5_i32 : i32 to index
    %c0_82 = arith.constant 0 : index
    %c0_83 = arith.constant 0 : index
    %315 = vector.load %arg4[%314, %c0_82, %c0_83] : memref<8x8x128xf32, #tpu.memory_space<vmem>>, vector<1x8x128xf32>
    %316 = vector.shape_cast %315 : vector<1x8x128xf32> to vector<8x128xf32>
    %317 = vector.shape_cast %313 : vector<8x128xf32> to vector<1x8x128xf32>
    tpu.vector_store %arg4[%314, %c0_82, %c0_83], %317 {strides = array<i32>} : memref<8x8x128xf32, #tpu.memory_space<vmem>>, vector<1x8x128xf32>,
    %318 = arith.index_cast %c5_i32 : i32 to index
    %c0_84 = arith.constant 0 : index
    %c0_85 = arith.constant 0 : index
    %319 = vector.load %arg5[%318, %c0_84, %c0_85] : memref<8x8x128xf32, #tpu.memory_space<vmem>>, vector<1x8x128xf32>
    %320 = vector.shape_cast %319 : vector<1x8x128xf32> to vector<8x128xf32>
    %321 = vector.shape_cast %308 : vector<8x128xf32> to vector<1x8x128xf32>
    tpu.vector_store %arg5[%318, %c0_84, %c0_85], %321 {strides = array<i32>} : memref<8x8x128xf32, #tpu.memory_space<vmem>>, vector<1x8x128xf32>,
    %322 = arith.index_cast %c5_i32 : i32 to index
    %c0_86 = arith.constant 0 : index
    %c0_87 = arith.constant 0 : index
    %323 = vector.load %arg6[%322, %c0_86, %c0_87] : memref<8x8x128xf32, #tpu.memory_space<vmem>>, vector<1x8x128xf32>
    %324 = vector.shape_cast %323 : vector<1x8x128xf32> to vector<8x128xf32>
    %325 = vector.shape_cast %310 : vector<8x128xf32> to vector<1x8x128xf32>
    tpu.vector_store %arg6[%322, %c0_86, %c0_87], %325 {strides = array<i32>} : memref<8x8x128xf32, #tpu.memory_space<vmem>>, vector<1x8x128xf32>,
    %c6_i32 = arith.constant 6 : i32
    %326 = arith.index_cast %c6_i32 : i32 to index
    %c0_88 = arith.constant 0 : index
    %c0_89 = arith.constant 0 : index
    %327 = vector.load %arg2[%326, %c0_88, %c0_89] : memref<8x8x512xf32, #tpu.memory_space<vmem>>, vector<1x8x512xf32>
    %328 = vector.shape_cast %327 : vector<1x8x512xf32> to vector<8x512xf32>
    %329 = arith.truncf %313 : vector<8x128xf32> to vector<8x128xbf16>
    %cst_90 = arith.constant dense<0.000000e+00> : vector<8x512xf32>
    %330 = tpu.matmul %329, %3, %cst_90 {dimension_numbers = #tpu.dot_dimension_numbers<[1], [0], [0], [1], [0, 0, 1, 1], [], []>} : vector<8x128xbf16>, vector<128x512xbf16>, vector<8x512xf32> -> vector<8x512xf32>
    %331 = arith.addf %328, %330 : vector<8x512xf32>
    %332 = vector.extract_strided_slice %331 {offsets = [0, 0], sizes = [8, 128], strides = [1, 1]} : vector<8x512xf32> to vector<8x128xf32>
    %333 = vector.extract_strided_slice %331 {offsets = [0, 128], sizes = [8, 128], strides = [1, 1]} : vector<8x512xf32> to vector<8x128xf32>
    %334 = vector.extract_strided_slice %331 {offsets = [0, 256], sizes = [8, 128], strides = [1, 1]} : vector<8x512xf32> to vector<8x128xf32>
    %335 = vector.extract_strided_slice %331 {offsets = [0, 384], sizes = [8, 128], strides = [1, 1]} : vector<8x512xf32> to vector<8x128xf32>
    %336 = math.tanh %332 : vector<8x128xf32>
    %337 = arith.negf %334 : vector<8x128xf32>
    %338 = math.exp %337 : vector<8x128xf32>
    %cst_91 = arith.constant 1.000000e+00 : f32
    %339 = vector.broadcast %cst_91 : f32 to vector<8x128xf32>
    %340 = arith.addf %339, %338 : vector<8x128xf32>
    %341 = arith.divf %339, %340 : vector<8x128xf32>
    %342 = arith.negf %335 : vector<8x128xf32>
    %343 = math.exp %342 : vector<8x128xf32>
    %cst_92 = arith.constant 1.000000e+00 : f32
    %344 = vector.broadcast %cst_92 : f32 to vector<8x128xf32>
    %345 = arith.addf %344, %343 : vector<8x128xf32>
    %346 = arith.divf %344, %345 : vector<8x128xf32>
    %cst_93 = arith.constant 0.000000e+00 : f32
    %347 = vector.broadcast %cst_93 : f32 to vector<8x128xf32>
    %348 = arith.minimumf %334, %347 : vector<8x128xf32>
    %349 = math.absf %334 : vector<8x128xf32>
    %cst_94 = arith.constant 0.000000e+00 : f32
    %350 = vector.broadcast %cst_94 : f32 to vector<8x128xf32>
    %351 = arith.subf %350, %349 : vector<8x128xf32>
    %352 = math.exp %351 : vector<8x128xf32>
    %353 = math.log1p %352 : vector<8x128xf32>
    %354 = arith.subf %348, %353 : vector<8x128xf32>
    %355 = arith.addf %354, %303 : vector<8x128xf32>
    %356 = arith.maximumf %355, %333 : vector<8x128xf32>
    %357 = arith.subf %333, %356 : vector<8x128xf32>
    %358 = math.exp %357 : vector<8x128xf32>
    %359 = arith.mulf %341, %308 : vector<8x128xf32>
    %360 = arith.mulf %358, %336 : vector<8x128xf32>
    %361 = arith.addf %359, %360 : vector<8x128xf32>
    %362 = arith.mulf %341, %310 : vector<8x128xf32>
    %363 = arith.addf %362, %358 : vector<8x128xf32>
    %364 = arith.mulf %346, %361 : vector<8x128xf32>
    %365 = tpu.reciprocal %363 {approx = true} : vector<8x128xf32> -> vector<8x128xf32>
    %366 = arith.mulf %364, %365 : vector<8x128xf32>
    %367 = arith.index_cast %c6_i32 : i32 to index
    %c0_95 = arith.constant 0 : index
    %c0_96 = arith.constant 0 : index
    %368 = vector.load %arg4[%367, %c0_95, %c0_96] : memref<8x8x128xf32, #tpu.memory_space<vmem>>, vector<1x8x128xf32>
    %369 = vector.shape_cast %368 : vector<1x8x128xf32> to vector<8x128xf32>
    %370 = vector.shape_cast %366 : vector<8x128xf32> to vector<1x8x128xf32>
    tpu.vector_store %arg4[%367, %c0_95, %c0_96], %370 {strides = array<i32>} : memref<8x8x128xf32, #tpu.memory_space<vmem>>, vector<1x8x128xf32>,
    %371 = arith.index_cast %c6_i32 : i32 to index
    %c0_97 = arith.constant 0 : index
    %c0_98 = arith.constant 0 : index
    %372 = vector.load %arg5[%371, %c0_97, %c0_98] : memref<8x8x128xf32, #tpu.memory_space<vmem>>, vector<1x8x128xf32>
    %373 = vector.shape_cast %372 : vector<1x8x128xf32> to vector<8x128xf32>
    %374 = vector.shape_cast %361 : vector<8x128xf32> to vector<1x8x128xf32>
    tpu.vector_store %arg5[%371, %c0_97, %c0_98], %374 {strides = array<i32>} : memref<8x8x128xf32, #tpu.memory_space<vmem>>, vector<1x8x128xf32>,
    %375 = arith.index_cast %c6_i32 : i32 to index
    %c0_99 = arith.constant 0 : index
    %c0_100 = arith.constant 0 : index
    %376 = vector.load %arg6[%375, %c0_99, %c0_100] : memref<8x8x128xf32, #tpu.memory_space<vmem>>, vector<1x8x128xf32>
    %377 = vector.shape_cast %376 : vector<1x8x128xf32> to vector<8x128xf32>
    %378 = vector.shape_cast %363 : vector<8x128xf32> to vector<1x8x128xf32>
    tpu.vector_store %arg6[%375, %c0_99, %c0_100], %378 {strides = array<i32>} : memref<8x8x128xf32, #tpu.memory_space<vmem>>, vector<1x8x128xf32>,
    %c7_i32 = arith.constant 7 : i32
    %379 = arith.index_cast %c7_i32 : i32 to index
    %c0_101 = arith.constant 0 : index
    %c0_102 = arith.constant 0 : index
    %380 = vector.load %arg2[%379, %c0_101, %c0_102] : memref<8x8x512xf32, #tpu.memory_space<vmem>>, vector<1x8x512xf32>
    %381 = vector.shape_cast %380 : vector<1x8x512xf32> to vector<8x512xf32>
    %382 = arith.truncf %366 : vector<8x128xf32> to vector<8x128xbf16>
    %cst_103 = arith.constant dense<0.000000e+00> : vector<8x512xf32>
    %383 = tpu.matmul %382, %3, %cst_103 {dimension_numbers = #tpu.dot_dimension_numbers<[1], [0], [0], [1], [0, 0, 1, 1], [], []>} : vector<8x128xbf16>, vector<128x512xbf16>, vector<8x512xf32> -> vector<8x512xf32>
    %384 = arith.addf %381, %383 : vector<8x512xf32>
    %385 = vector.extract_strided_slice %384 {offsets = [0, 0], sizes = [8, 128], strides = [1, 1]} : vector<8x512xf32> to vector<8x128xf32>
    %386 = vector.extract_strided_slice %384 {offsets = [0, 128], sizes = [8, 128], strides = [1, 1]} : vector<8x512xf32> to vector<8x128xf32>
    %387 = vector.extract_strided_slice %384 {offsets = [0, 256], sizes = [8, 128], strides = [1, 1]} : vector<8x512xf32> to vector<8x128xf32>
    %388 = vector.extract_strided_slice %384 {offsets = [0, 384], sizes = [8, 128], strides = [1, 1]} : vector<8x512xf32> to vector<8x128xf32>
    %389 = math.tanh %385 : vector<8x128xf32>
    %390 = arith.negf %387 : vector<8x128xf32>
    %391 = math.exp %390 : vector<8x128xf32>
    %cst_104 = arith.constant 1.000000e+00 : f32
    %392 = vector.broadcast %cst_104 : f32 to vector<8x128xf32>
    %393 = arith.addf %392, %391 : vector<8x128xf32>
    %394 = arith.divf %392, %393 : vector<8x128xf32>
    %395 = arith.negf %388 : vector<8x128xf32>
    %396 = math.exp %395 : vector<8x128xf32>
    %cst_105 = arith.constant 1.000000e+00 : f32
    %397 = vector.broadcast %cst_105 : f32 to vector<8x128xf32>
    %398 = arith.addf %397, %396 : vector<8x128xf32>
    %399 = arith.divf %397, %398 : vector<8x128xf32>
    %cst_106 = arith.constant 0.000000e+00 : f32
    %400 = vector.broadcast %cst_106 : f32 to vector<8x128xf32>
    %401 = arith.minimumf %387, %400 : vector<8x128xf32>
    %402 = math.absf %387 : vector<8x128xf32>
    %cst_107 = arith.constant 0.000000e+00 : f32
    %403 = vector.broadcast %cst_107 : f32 to vector<8x128xf32>
    %404 = arith.subf %403, %402 : vector<8x128xf32>
    %405 = math.exp %404 : vector<8x128xf32>
    %406 = math.log1p %405 : vector<8x128xf32>
    %407 = arith.subf %401, %406 : vector<8x128xf32>
    %408 = arith.addf %407, %356 : vector<8x128xf32>
    %409 = arith.maximumf %408, %386 : vector<8x128xf32>
    %410 = arith.subf %386, %409 : vector<8x128xf32>
    %411 = math.exp %410 : vector<8x128xf32>
    %412 = arith.mulf %394, %361 : vector<8x128xf32>
    %413 = arith.mulf %411, %389 : vector<8x128xf32>
    %414 = arith.addf %412, %413 : vector<8x128xf32>
    %415 = arith.mulf %394, %363 : vector<8x128xf32>
    %416 = arith.addf %415, %411 : vector<8x128xf32>
    %417 = arith.mulf %399, %414 : vector<8x128xf32>
    %418 = tpu.reciprocal %416 {approx = true} : vector<8x128xf32> -> vector<8x128xf32>
    %419 = arith.mulf %417, %418 : vector<8x128xf32>
    %420 = arith.index_cast %c7_i32 : i32 to index
    %c0_108 = arith.constant 0 : index
    %c0_109 = arith.constant 0 : index
    %421 = vector.load %arg4[%420, %c0_108, %c0_109] : memref<8x8x128xf32, #tpu.memory_space<vmem>>, vector<1x8x128xf32>
    %422 = vector.shape_cast %421 : vector<1x8x128xf32> to vector<8x128xf32>
    %423 = vector.shape_cast %419 : vector<8x128xf32> to vector<1x8x128xf32>
    tpu.vector_store %arg4[%420, %c0_108, %c0_109], %423 {strides = array<i32>} : memref<8x8x128xf32, #tpu.memory_space<vmem>>, vector<1x8x128xf32>,
    %424 = arith.index_cast %c7_i32 : i32 to index
    %c0_110 = arith.constant 0 : index
    %c0_111 = arith.constant 0 : index
    %425 = vector.load %arg5[%424, %c0_110, %c0_111] : memref<8x8x128xf32, #tpu.memory_space<vmem>>, vector<1x8x128xf32>
    %426 = vector.shape_cast %425 : vector<1x8x128xf32> to vector<8x128xf32>
    %427 = vector.shape_cast %414 : vector<8x128xf32> to vector<1x8x128xf32>
    tpu.vector_store %arg5[%424, %c0_110, %c0_111], %427 {strides = array<i32>} : memref<8x8x128xf32, #tpu.memory_space<vmem>>, vector<1x8x128xf32>,
    %428 = arith.index_cast %c7_i32 : i32 to index
    %c0_112 = arith.constant 0 : index
    %c0_113 = arith.constant 0 : index
    %429 = vector.load %arg6[%428, %c0_112, %c0_113] : memref<8x8x128xf32, #tpu.memory_space<vmem>>, vector<1x8x128xf32>
    %430 = vector.shape_cast %429 : vector<1x8x128xf32> to vector<8x128xf32>
    %431 = vector.shape_cast %416 : vector<8x128xf32> to vector<1x8x128xf32>
    tpu.vector_store %arg6[%428, %c0_112, %c0_113], %431 {strides = array<i32>} : memref<8x8x128xf32, #tpu.memory_space<vmem>>, vector<1x8x128xf32>,
    %c8_i32 = arith.constant 8 : i32
    %c0_114 = arith.constant 0 : index
    %c0_115 = arith.constant 0 : index
    %432 = vector.load %arg7[%c0_114, %c0_115] : memref<8x128xf32, #tpu.memory_space<vmem>>, vector<8x128xf32>
    tpu.vector_store %arg7[%c0_114, %c0_115], %419 {strides = array<i32>} : memref<8x128xf32, #tpu.memory_space<vmem>>, vector<8x128xf32>,
    %c0_116 = arith.constant 0 : index
    %c0_117 = arith.constant 0 : index
    %433 = vector.load %arg8[%c0_116, %c0_117] : memref<8x128xf32, #tpu.memory_space<vmem>>, vector<8x128xf32>
    tpu.vector_store %arg8[%c0_116, %c0_117], %414 {strides = array<i32>} : memref<8x128xf32, #tpu.memory_space<vmem>>, vector<8x128xf32>,
    %c0_118 = arith.constant 0 : index
    %c0_119 = arith.constant 0 : index
    %434 = vector.load %arg9[%c0_118, %c0_119] : memref<8x128xf32, #tpu.memory_space<vmem>>, vector<8x128xf32>
    tpu.vector_store %arg9[%c0_118, %c0_119], %416 {strides = array<i32>} : memref<8x128xf32, #tpu.memory_space<vmem>>, vector<8x128xf32>,
    %c0_120 = arith.constant 0 : index
    %c0_121 = arith.constant 0 : index
    %435 = vector.load %arg10[%c0_120, %c0_121] : memref<8x128xf32, #tpu.memory_space<vmem>>, vector<8x128xf32>
    tpu.vector_store %arg10[%c0_120, %c0_121], %409 {strides = array<i32>} : memref<8x128xf32, #tpu.memory_space<vmem>>, vector<8x128xf32>,
    return
  }
  func.func @transform_0(%arg0: i32, %arg1: i32) -> (i32, i32, i32) {
    %c0_i32 = arith.constant 0 : i32
    %c0_i32_0 = arith.constant 0 : i32
    return %arg1, %arg0, %c0_i32 : i32, i32, i32
  }
  func.func @transform_1(%arg0: i32, %arg1: i32) -> (i32, i32) {
    %c0_i32 = arith.constant 0 : i32
    %c0_i32_0 = arith.constant 0 : i32
    %c0_i32_1 = arith.constant 0 : i32
    return %c0_i32, %c0_i32_0 : i32, i32
  }
  func.func @transform_2(%arg0: i32, %arg1: i32) -> (i32, i32, i32) {
    %c0_i32 = arith.constant 0 : i32
    %c0_i32_0 = arith.constant 0 : i32
    return %arg1, %arg0, %c0_i32 : i32, i32, i32
  }
  func.func @transform_3(%arg0: i32, %arg1: i32) -> (i32, i32, i32) {
    %c0_i32 = arith.constant 0 : i32
    %c0_i32_0 = arith.constant 0 : i32
    return %arg1, %arg0, %c0_i32 : i32, i32, i32
  }
  func.func @transform_4(%arg0: i32, %arg1: i32) -> (i32, i32, i32) {
    %c0_i32 = arith.constant 0 : i32
    %c0_i32_0 = arith.constant 0 : i32
    return %arg1, %arg0, %c0_i32 : i32, i32, i32
  }
}

</mosaic_0001>

<bundles_post_ra>
// kernel: slstm_forward.2
= control target key start
LH: loop header
LB: loop body
LE: loop exit
PB: predicated region body
PF: predicated region fallthrough
CT: control target
= control target key end

     0   :  { %v1666_v1 = vmov 0   ;;  %v1667_v30 = vmov 0.0|0.0   ;;  %s2548_s1 = inlined_call_operand.vmem [shape: bf16[128,512], index: 1, kind: input, shape index: {}]   ;;  %s2549_s0 = inlined_call_operand.vmem [shape: f32[8,8,512], index: 0, kind: input, shape index: {}]   ;;  %s2550_s4 = inlined_call_operand.vmem [shape: f32[8,8,128], index: 4, kind: output, shape index: {2}]   ;;  %s2551_s3 = inlined_call_operand.vmem [shape: f32[8,8,128], index: 3, kind: output, shape index: {1}]   ;;  %s2552_s2 = inlined_call_operand.vmem [shape: f32[8,8,128], index: 2, kind: output, shape index: {0}]  }
   0x1   :  { %v1696_v0 = vld [vmem:[%s2548_s1 + $0xc] ss:$16 sps:$4 sm:$0xff]   ;;  %297 = vmatprep.mubr.bf16.mxu1 %v1666_v1  ;;  %256 = vmatprep.mubr.bf16.mxu0 %v1666_v1  ;;  %v1703_v2 = vld [vmem:[%s2548_s1 + $0x8] ss:$16 sps:$4 sm:$0xff]   ;;  %v1749_v10 = vld [vmem:[%s2548_s1 + $0x4] ss:$16 sps:$4 sm:$0xff]  }
   0x2   :  { %265 = vmatprep.subr.bf16.mxu1 %v1696_v0  ;;  %v1709_v3 = vld [vmem:[%s2548_s1 + $0x2c] ss:$16 sps:$4 sm:$0xff]   ;;  %v1715_v4 = vld [vmem:[%s2548_s1 + $0x28] ss:$16 sps:$4 sm:$0xff]   ;;  %v1754_v11 = vld [vmem:[%s2548_s1] ss:$16 sps:$4 sm:$0xff]   ;;  %224 = vmatprep.subr.bf16.mxu0 %v1749_v10 }
   0x3   :  { %266 = vmatpush1.bf16.msra.mxu1 %v1703_v2  ;;  %v1721_v5 = vld [vmem:[%s2548_s1 + $0x4c] ss:$16 sps:$4 sm:$0xff]   ;;  %v1727_v6 = vld [vmem:[%s2548_s1 + $0x48] ss:$16 sps:$4 sm:$0xff]   ;;  %v1760_v12 = vld [vmem:[%s2548_s1 + $0x24] ss:$16 sps:$4 sm:$0xff]   ;;  %225 = vmatpush1.bf16.msra.mxu0 %v1754_v11 }
   0x4   :  { %267 = vmatprep.subr.bf16.mxu1 %v1709_v3  ;;  %v1733_v7 = vld [vmem:[%s2548_s1 + $0x6c] ss:$16 sps:$4 sm:$0xff]   ;;  %v1738_v8 = vld [vmem:[%s2548_s1 + $0x68] ss:$16 sps:$4 sm:$0xff]   ;;  %v1767_v13 = vld [vmem:[%s2548_s1 + $0x20] ss:$16 sps:$4 sm:$0xff]   ;;  %226 = vmatprep.subr.bf16.mxu0 %v1760_v12 }
   0x5   :  { %v1743_v9 = vld [vmem:[%s2548_s1 + $0x8c] ss:$16 sps:$4 sm:$0xff]   ;;  %v1773_v14 = vld [vmem:[%s2548_s1 + $0x88] ss:$16 sps:$4 sm:$0xff]   ;;  %v1779_v15 = vld [vmem:[%s2548_s1 + $0x44] ss:$16 sps:$4 sm:$0xff]  }
   0x6   :  { %v1785_v16 = vld [vmem:[%s2548_s1 + $0xac] ss:$16 sps:$4 sm:$0xff]   ;;  %v1791_v17 = vld [vmem:[%s2548_s1 + $0x40] ss:$16 sps:$4 sm:$0xff]   ;;  %v1797_v18 = vld [vmem:[%s2548_s1 + $0xa8] ss:$16 sps:$4 sm:$0xff]  }
   0x7   :  { %268 = vmatpush1.bf16.msra.mxu1 %v1715_v4  ;;  %227 = vmatpush1.bf16.msra.mxu0 %v1767_v13  ;;  %v1803_v19 = vld [vmem:[%s2548_s1 + $0x64] ss:$16 sps:$4 sm:$0xff]   ;;  %v1809_v20 = vld [vmem:[%s2548_s1 + $0xcc] ss:$16 sps:$4 sm:$0xff]   ;;  %v1815_v21 = vld [vmem:[%s2548_s1 + $0x60] ss:$16 sps:$4 sm:$0xff]  }
   0x8   :  { %269 = vmatprep.subr.bf16.mxu1 %v1721_v5  ;;  %228 = vmatprep.subr.bf16.mxu0 %v1779_v15  ;;  %v1821_v22 = vld [vmem:[%s2548_s1 + $0xc8] ss:$16 sps:$4 sm:$0xff]   ;;  %v1827_v23 = vld [vmem:[%s2548_s1 + $0x84] ss:$16 sps:$4 sm:$0xff]   ;;  %v1833_v24 = vld [vmem:[%s2548_s1 + $0xec] ss:$16 sps:$4 sm:$0xff]  }
   0x9   :  { %v1839_v25 = vld [vmem:[%s2548_s1 + $0x80] ss:$16 sps:$4 sm:$0xff]   ;;  %v1845_v26 = vld [vmem:[%s2548_s1 + $0xe8] ss:$16 sps:$4 sm:$0xff]   ;;  %v1851_v27 = vld [vmem:[%s2548_s1 + $0xa4] ss:$16 sps:$4 sm:$0xff]  }
   0xa   :  { %v1858_v28 = vld [vmem:[%s2548_s1 + $0xa0] ss:$16 sps:$4 sm:$0xff]   ;;  %v1865_v29 = vld [vmem:[%s2548_s1 + $0xc4] ss:$16 sps:$4 sm:$0xff]   ;;  %v62_v51 = vld [vmem:[%s2549_s0 + $0x18] sm:$0xff] }
   0xb   :  { %270 = vmatpush1.bf16.msra.mxu1 %v1727_v6  ;;  %229 = vmatpush1.bf16.msra.mxu0 %v1791_v17  ;;  %v1872_v31 = vld [vmem:[%s2548_s1 + $0xc0] ss:$16 sps:$4 sm:$0xff]   ;;  %v1878_v32 = vld [vmem:[%s2548_s1 + $0xe4] ss:$16 sps:$4 sm:$0xff]   ;;  %v60_v55 = vld [vmem:[%s2549_s0 + $0x8] sm:$0xff] }
   0xc   :  { %271 = vmatprep.subr.bf16.mxu1 %v1733_v7  ;;  %230 = vmatprep.subr.bf16.mxu0 %v1803_v19  ;;  %v1887_v33 = vld [vmem:[%s2548_s1 + $0xe0] ss:$16 sps:$4 sm:$0xff]  }
   0xd   :  { %v61_v34 = vld [vmem:[%s2549_s0 + $0x10] sm:$0xff] }
   0xf   :  { %272 = vmatpush1.bf16.msra.mxu1 %v1738_v8  ;;  %231 = vmatpush1.bf16.msra.mxu0 %v1815_v21 }
  0x10   :  { %273 = vmatprep.subr.bf16.mxu1 %v1743_v9  ;;  %232 = vmatprep.subr.bf16.mxu0 %v1827_v23 }
  0x13   :  { %274 = vmatpush1.bf16.msra.mxu1 %v1773_v14  ;;  %233 = vmatpush1.bf16.msra.mxu0 %v1839_v25 }
  0x14   :  { %275 = vmatprep.subr.bf16.mxu1 %v1785_v16  ;;  %234 = vmatprep.subr.bf16.mxu0 %v1851_v27 }
  0x17   :  { %276 = vmatpush1.bf16.msra.mxu1 %v1797_v18  ;;  %235 = vmatpush1.bf16.msra.mxu0 %v1858_v28 }
  0x18   :  { %277 = vmatprep.subr.bf16.mxu1 %v1809_v20  ;;  %236 = vmatprep.subr.bf16.mxu0 %v1865_v29 }
  0x1b   :  { %278 = vmatpush1.bf16.msra.mxu1 %v1821_v22  ;;  %237 = vmatpush1.bf16.msra.mxu0 %v1872_v31 }
  0x1c   :  { %279 = vmatprep.subr.bf16.mxu1 %v1833_v24  ;;  %238 = vmatprep.subr.bf16.mxu0 %v1878_v32 }
  0x1f   :  { %280 = vmatpush1.bf16.msra.mxu1 %v1845_v26  ;;  %239 = vmatpush1.bf16.msra.mxu0 %v1887_v33 }
  0x20   :  { %401 = vmatprep.subr.bf16.mxu1 %v1696_v0  ;;  %360 = vmatprep.subr.bf16.mxu0 %v1749_v10 }
  0x22   :  { %298 = vmatmul.mubr.bf16.vlgmr.msra.gmra.mrb[0].mxu1 %v1667_v30  ;;  %257 = vmatmul.mubr.bf16.vlgmr.msra.gmra.mrb[0].mxu0 %v1667_v30 }
  0x23   :  { %402 = vmatpush1.bf16.msra.mxu1 %v1703_v2  ;;  %433 = vmatprep.mubr.bf16.mxu1 %v1666_v1 }
  0x24   :  { %403 = vmatprep.subr.bf16.mxu1 %v1709_v3  ;;  %361 = vmatpush1.bf16.msra.mxu0 %v1754_v11 }
  0x25   :  { %392 = vmatprep.mubr.bf16.mxu0 %v1666_v1  ;;  %362 = vmatprep.subr.bf16.mxu0 %v1760_v12 }
  0x27   :  { %404 = vmatpush1.bf16.msra.mxu1 %v1715_v4 }
  0x28   :  { %405 = vmatprep.subr.bf16.mxu1 %v1721_v5  ;;  %363 = vmatpush1.bf16.msra.mxu0 %v1767_v13 }
  0x29   :  { %364 = vmatprep.subr.bf16.mxu0 %v1779_v15 }
  0x2b   :  { %406 = vmatpush1.bf16.msra.mxu1 %v1727_v6 }
  0x2c   :  { %407 = vmatprep.subr.bf16.mxu1 %v1733_v7  ;;  %365 = vmatpush1.bf16.msra.mxu0 %v1791_v17 }
  0x2d   :  { %366 = vmatprep.subr.bf16.mxu0 %v1803_v19 }
  0x2f   :  { %408 = vmatpush1.bf16.msra.mxu1 %v1738_v8 }
  0x30   :  { %409 = vmatprep.subr.bf16.mxu1 %v1743_v9  ;;  %367 = vmatpush1.bf16.msra.mxu0 %v1815_v21 }
  0x31   :  { %368 = vmatprep.subr.bf16.mxu0 %v1827_v23 }
  0x33   :  { %410 = vmatpush1.bf16.msra.mxu1 %v1773_v14 }
  0x34   :  { %411 = vmatprep.subr.bf16.mxu1 %v1785_v16  ;;  %369 = vmatpush1.bf16.msra.mxu0 %v1839_v25 }
  0x35   :  { %370 = vmatprep.subr.bf16.mxu0 %v1851_v27 }
  0x37   :  { %412 = vmatpush1.bf16.msra.mxu1 %v1797_v18 }
  0x38   :  { %413 = vmatprep.subr.bf16.mxu1 %v1809_v20  ;;  %371 = vmatpush1.bf16.msra.mxu0 %v1858_v28 }
  0x39   :  { %372 = vmatprep.subr.bf16.mxu0 %v1865_v29 }
  0x3b   :  { %414 = vmatpush1.bf16.msra.mxu1 %v1821_v22 }
  0x3c   :  { %415 = vmatprep.subr.bf16.mxu1 %v1833_v24  ;;  %373 = vmatpush1.bf16.msra.mxu0 %v1872_v31 }
  0x3d   :  { %374 = vmatprep.subr.bf16.mxu0 %v1878_v32 }
  0x3f   :  { %416 = vmatpush1.bf16.msra.mxu1 %v1845_v26 }
  0x40   :  { %540 = vmatprep.subr.bf16.mxu1 %v1696_v0  ;;  %375 = vmatpush1.bf16.msra.mxu0 %v1887_v33 }
  0x41   :  { %499 = vmatprep.subr.bf16.mxu0 %v1749_v10 }
  0xf5   :  { %v299_v35 = vpop.f32.mrb[0].mxu1  ;;  %v258_v43 = vpop.f32.mrb[0].mxu0 }
  0xf6   :  { %v308_v36 = vadd.f32 %v299_v35, %v61_v34  ;;  %v301_v37 = vpop.f32.mrb[1].mxu1  ;;  %v260_v44 = vpop.f32.mrb[1].mxu0  ;;  %v59_v34 = vld [vmem:[%s2549_s0] sm:$0xff] }
  0xf7   :  { %v303_v38 = vpop.f32.mrb[2].mxu1  ;;  %v262_v45 = vpop.f32.mrb[2].mxu0  ;;  %v309_v53 = vadd.f32 %v301_v37, %v62_v51  ;;  %v307_v62 = vadd.f32 %v260_v44, %v60_v55 }
  0xf8   :  { %v324_v39 = vand.u32 2147483647, %v308_v36  ;;  %v304_v40 = vpop.f32.mrb[3].mxu1  ;;  %v263_v46 = vpop.f32.mrb[3].mxu0  ;;  %v1375_v48 = vmul.f32 -1.442695, %v308_v36  ;;  %v306_v38 = vadd.f32 %v258_v43, %v59_v34 }
  0xf9   :  { %v323_v60 = vmin.f32 %v308_v36, 0.0  ;;  %v1376_v61 = vmul.f32 -1.442695, %v309_v53 }
  0xfa   :  { %v325_v41 = vsub.f32 0.0, %v324_v39 }
  0xfc   :  { %v326_v42 = vmul.f32 1.442695, %v325_v41 }
  0xfe   :  { %1490 = vpow2.f32 %v326_v42 }
 0x108   :  { %v1491_v47 = vpop.eup %1490 }
 0x109   :  { %v328_v49 = vadd.f32 1.0, %v1491_v47  ;;  %v331_v50 = vmul.f32 -0.5, %v1491_v47  ;;  %v334_v54 = vand.u32 2147483647, %v1491_v47 }
 0x10b   :  { %1492 = vlog2.f32 %v328_v49  ;;  %v332_v52 = vadd.f32 1.0, %v331_v50  ;;  %vm335_vm0 = vcmp.lt.f32.partialorder %v334_v54, 0.0004427343  ;;  %v1379_v54 = vld [vmem:[%s2549_s0 + $0x30] sm:$0xff] }
 0x10c   :  { %1494 = vpow2.f32 %v1375_v48 }
 0x10d   :  { %v333_v59 = vmul.f32 %v1491_v47, %v332_v52  ;;  %1496 = vpow2.f32 %v1376_v61 }
 0x115   :  { %v1493_v56 = vpop.eup %1492 }
 0x116   :  { %v1495_v57 = vpop.eup %1494  ;;  %v330_v58 = vmul.f32 0.6931472, %v1493_v56 }
 0x117   :  { %v314_v30 = vadd.f32 1.0, %v1495_v57  ;;  %v1497_v36 = vpop.eup %1496 }
 0x118   :  { %v336_v63 = vsel %vm335_vm0, %v333_v59, %v330_v58  ;;  %v320_v42 = vadd.f32 1.0, %v1497_v36 }
 0x119   :  { %v337_v35 = vsub.f32 %v323_v60, %v336_v63  ;;  %1498 = vrcp.f32 %v314_v30 }
 0x11a   :  { %1500 = vtanh.f32 %v306_v38 }
 0x11b   :  { %v1935_v37 = vmax.f32 %v337_v35, %v307_v62 }
 0x11d   :  { %v340_v39 = vsub.f32 %v307_v62, %v1935_v37 }
 0x11f   :  { %v341_v40 = vmul.f32 1.442695, %v340_v39 }
 0x121   :  { %1502 = vpow2.f32 %v341_v40 }
 0x122   :  { %1504 = vrcp.f32 %v320_v42  ;;  %v1380_v42 = vld [vmem:[%s2549_s0 + $0x38] sm:$0xff] }
 0x123   :  { %v1499_v41 = vpop.eup %1498 }
 0x124   :  { %v1501_v44 = vpop.eup %1500  ;;  %v343_v45 = vmul.f32 0.0, %v1499_v41 }
 0x12b   :  { %v1503_v46 = vpop.eup %1502 }
 0x12c   :  { %v344_v47 = vmul.f32 %v1503_v46, %v1501_v44  ;;  %v1938_v48 = vadd.f32 %v1503_v46, %v343_v45  ;;  %v1505_v49 = vpop.eup %1504 }
 0x12e   :  { %1506 = vrcp.f32 %v1938_v48  ;;  %353 = vst [vmem:[%s2550_s4] sm:$0xff] %v1938_v48  ;;  %v1945_v43 = vadd.f32 %v344_v47, %v343_v45 }
 0x130   :  { %352 = vst [vmem:[%s2551_s3] sm:$0xff] %v1945_v43  ;;  %v348_v50 = vmul.f32 %v1505_v49, %v1945_v43 }
 0x138   :  { %v1507_v51 = vpop.eup %1506 }
 0x139   :  { %v350_v52 = vmul.f32 %v1507_v51, %v348_v50 }
 0x13b   :  { %351 = vst [vmem:[%s2552_s2] sm:$0xff] %v350_v52  ;;  %v359_v53 = vpack.c.bf16 %v350_v52, %v350_v52  ;;  %v1378_v52 = vld [vmem:[%s2549_s0 + $0x28] sm:$0xff] }
 0x13d   :  { %393 = vmatmul.mubr.bf16.vlgmr.msra.gmra.mrb[4].mxu0 %v359_v53  ;;  %434 = vmatmul.mubr.bf16.vlgmr.msra.gmra.mrb[4].mxu1 %v359_v53 }
 0x13e   :  { %500 = vmatpush1.bf16.msra.mxu0 %v1754_v11  ;;  %541 = vmatpush1.bf16.msra.mxu1 %v1703_v2 }
 0x13f   :  { %501 = vmatprep.subr.bf16.mxu0 %v1760_v12  ;;  %542 = vmatprep.subr.bf16.mxu1 %v1709_v3 }
 0x140   :  { %531 = vmatprep.mubr.bf16.mxu0 %v1666_v1  ;;  %572 = vmatprep.mubr.bf16.mxu1 %v1666_v1 }
 0x142   :  { %502 = vmatpush1.bf16.msra.mxu0 %v1767_v13  ;;  %543 = vmatpush1.bf16.msra.mxu1 %v1715_v4 }
 0x143   :  { %503 = vmatprep.subr.bf16.mxu0 %v1779_v15  ;;  %544 = vmatprep.subr.bf16.mxu1 %v1721_v5 }
 0x146   :  { %504 = vmatpush1.bf16.msra.mxu0 %v1791_v17  ;;  %545 = vmatpush1.bf16.msra.mxu1 %v1727_v6 }
 0x147   :  { %505 = vmatprep.subr.bf16.mxu0 %v1803_v19  ;;  %546 = vmatprep.subr.bf16.mxu1 %v1733_v7 }
 0x14a   :  { %506 = vmatpush1.bf16.msra.mxu0 %v1815_v21  ;;  %547 = vmatpush1.bf16.msra.mxu1 %v1738_v8 }
 0x14b   :  { %507 = vmatprep.subr.bf16.mxu0 %v1827_v23  ;;  %548 = vmatprep.subr.bf16.mxu1 %v1743_v9 }
 0x14e   :  { %508 = vmatpush1.bf16.msra.mxu0 %v1839_v25  ;;  %549 = vmatpush1.bf16.msra.mxu1 %v1773_v14 }
 0x14f   :  { %509 = vmatprep.subr.bf16.mxu0 %v1851_v27  ;;  %550 = vmatprep.subr.bf16.mxu1 %v1785_v16 }
 0x152   :  { %510 = vmatpush1.bf16.msra.mxu0 %v1858_v28  ;;  %551 = vmatpush1.bf16.msra.mxu1 %v1797_v18 }
 0x153   :  { %511 = vmatprep.subr.bf16.mxu0 %v1865_v29  ;;  %552 = vmatprep.subr.bf16.mxu1 %v1809_v20 }
 0x156   :  { %512 = vmatpush1.bf16.msra.mxu0 %v1872_v31  ;;  %553 = vmatpush1.bf16.msra.mxu1 %v1821_v22 }
 0x157   :  { %513 = vmatprep.subr.bf16.mxu0 %v1878_v32  ;;  %554 = vmatprep.subr.bf16.mxu1 %v1833_v24 }
 0x15a   :  { %514 = vmatpush1.bf16.msra.mxu0 %v1887_v33  ;;  %555 = vmatpush1.bf16.msra.mxu1 %v1845_v26 }
 0x15b   :  { %638 = vmatprep.subr.bf16.mxu0 %v1749_v10  ;;  %679 = vmatprep.subr.bf16.mxu1 %v1696_v0 }
 0x210   :  { %v394_v55 = vpop.f32.mrb[4].mxu0  ;;  %v435_v56 = vpop.f32.mrb[4].mxu1 }
 0x211   :  { %v444_v57 = vadd.f32 %v1379_v54, %v435_v56  ;;  %v396_v58 = vpop.f32.mrb[5].mxu0  ;;  %v437_v59 = vpop.f32.mrb[5].mxu1 }
 0x212   :  { %v398_v60 = vpop.f32.mrb[6].mxu0  ;;  %v439_v61 = vpop.f32.mrb[6].mxu1  ;;  %v445_v46 = vadd.f32 %v1380_v42, %v437_v59 }
 0x213   :  { %v460_v62 = vand.u32 2147483647, %v444_v57  ;;  %v399_v63 = vpop.f32.mrb[7].mxu0  ;;  %v440_v30 = vpop.f32.mrb[7].mxu1  ;;  %v1381_v40 = vmul.f32 -1.442695, %v444_v57 }
 0x214   :  { %v459_v50 = vmin.f32 %v444_v57, 0.0  ;;  %v1382_v56 = vmul.f32 -1.442695, %v445_v46  ;;  %v1377_v60 = vld [vmem:[%s2549_s0 + $0x20] sm:$0xff] }
 0x215   :  { %v461_v34 = vsub.f32 0.0, %v460_v62  ;;  %v443_v62 = vadd.f32 %v1378_v52, %v396_v58  ;;  %v442_v57 = vadd.f32 %v1377_v60, %v394_v55 }
 0x217   :  { %v462_v35 = vmul.f32 1.442695, %v461_v34 }
 0x219   :  { %1508 = vpow2.f32 %v462_v35 }
 0x223   :  { %v1509_v38 = vpop.eup %1508 }
 0x224   :  { %v464_v39 = vadd.f32 1.0, %v1509_v38  ;;  %v467_v36 = vmul.f32 -0.5, %v1509_v38  ;;  %v470_v44 = vand.u32 2147483647, %v1509_v38 }
 0x226   :  { %1510 = vlog2.f32 %v464_v39  ;;  %v468_v41 = vadd.f32 1.0, %v467_v36  ;;  %vm471_vm1 = vcmp.lt.f32.partialorder %v470_v44, 0.0004427343 }
 0x227   :  { %1512 = vpow2.f32 %v1381_v40 }
 0x228   :  { %v469_v49 = vmul.f32 %v1509_v38, %v468_v41  ;;  %1514 = vpow2.f32 %v1382_v56 }
 0x230   :  { %v1511_v45 = vpop.eup %1510 }
 0x231   :  { %v466_v47 = vmul.f32 0.6931472, %v1511_v45  ;;  %v1513_v51 = vpop.eup %1512 }
 0x232   :  { %v450_v61 = vadd.f32 1.0, %v1513_v51  ;;  %v1515_v35 = vpop.eup %1514 }
 0x233   :  { %v472_v53 = vsel %vm471_vm1, %v469_v49, %v466_v47  ;;  %v456_v39 = vadd.f32 1.0, %v1515_v35  ;;  %v1388_v47 = vld [vmem:[%s2549_s0 + $0x50] sm:$0xff] }
 0x234   :  { %v473_v54 = vsub.f32 %v459_v50, %v472_v53  ;;  %1516 = vrcp.f32 %v450_v61 }
 0x235   :  { %1518 = vtanh.f32 %v442_v57 }
 0x236   :  { %v474_v59 = vadd.f32 %v473_v54, %v1935_v37 }
 0x238   :  { %v2002_v63 = vmax.f32 %v474_v59, %v443_v62 }
 0x23a   :  { %v476_v30 = vsub.f32 %v443_v62, %v2002_v63 }
 0x23c   :  { %v477_v34 = vmul.f32 1.442695, %v476_v30 }
 0x23e   :  { %1520 = vpow2.f32 %v477_v34  ;;  %v1517_v38 = vpop.eup %1516 }
 0x23f   :  { %v1519_v40 = vpop.eup %1518  ;;  %v482_v36 = vmul.f32 %v1517_v38, %v1938_v48  ;;  %1522 = vrcp.f32 %v456_v39  ;;  %v479_v37 = vmul.f32 %v1517_v38, %v1945_v43 }
 0x248   :  { %v1521_v41 = vpop.eup %1520 }
 0x249   :  { %v480_v58 = vmul.f32 %v1521_v41, %v1519_v40  ;;  %v2006_v42 = vadd.f32 %v1521_v41, %v482_v36  ;;  %v1523_v48 = vpop.eup %1522  ;;  %v1389_v40 = vld [vmem:[%s2549_s0 + $0x58] sm:$0xff] }
 0x24b   :  { %1524 = vrcp.f32 %v2006_v42  ;;  %1385 = vst [vmem:[%s2550_s4 + $0x8] sm:$0xff] %v2006_v42  ;;  %v2014_v55 = vadd.f32 %v480_v58, %v479_v37 }
 0x24d   :  { %1384 = vst [vmem:[%s2551_s3 + $0x8] sm:$0xff] %v2014_v55  ;;  %v484_v44 = vmul.f32 %v1523_v48, %v2014_v55 }
 0x255   :  { %v1525_v45 = vpop.eup %1524 }
 0x256   :  { %v486_v46 = vmul.f32 %v1525_v45, %v484_v44 }
 0x258   :  { %1383 = vst [vmem:[%s2552_s2 + $0x8] sm:$0xff] %v486_v46  ;;  %v498_v43 = vpack.c.bf16 %v486_v46, %v486_v46  ;;  %v1387_v46 = vld [vmem:[%s2549_s0 + $0x48] sm:$0xff] }
 0x25a   :  { %532 = vmatmul.mubr.bf16.vlgmr.msra.gmra.mrb[8].mxu0 %v498_v43  ;;  %573 = vmatmul.mubr.bf16.vlgmr.msra.gmra.mrb[8].mxu1 %v498_v43 }
 0x25b   :  { %639 = vmatpush1.bf16.msra.mxu0 %v1754_v11  ;;  %680 = vmatpush1.bf16.msra.mxu1 %v1703_v2 }
 0x25c   :  { %640 = vmatprep.subr.bf16.mxu0 %v1760_v12  ;;  %681 = vmatprep.subr.bf16.mxu1 %v1709_v3 }
 0x25d   :  { %670 = vmatprep.mubr.bf16.mxu0 %v1666_v1  ;;  %711 = vmatprep.mubr.bf16.mxu1 %v1666_v1 }
 0x25f   :  { %641 = vmatpush1.bf16.msra.mxu0 %v1767_v13  ;;  %682 = vmatpush1.bf16.msra.mxu1 %v1715_v4 }
 0x260   :  { %642 = vmatprep.subr.bf16.mxu0 %v1779_v15  ;;  %683 = vmatprep.subr.bf16.mxu1 %v1721_v5 }
 0x263   :  { %643 = vmatpush1.bf16.msra.mxu0 %v1791_v17  ;;  %684 = vmatpush1.bf16.msra.mxu1 %v1727_v6 }
 0x264   :  { %644 = vmatprep.subr.bf16.mxu0 %v1803_v19  ;;  %685 = vmatprep.subr.bf16.mxu1 %v1733_v7 }
 0x267   :  { %645 = vmatpush1.bf16.msra.mxu0 %v1815_v21  ;;  %686 = vmatpush1.bf16.msra.mxu1 %v1738_v8 }
 0x268   :  { %646 = vmatprep.subr.bf16.mxu0 %v1827_v23  ;;  %687 = vmatprep.subr.bf16.mxu1 %v1743_v9 }
 0x26b   :  { %647 = vmatpush1.bf16.msra.mxu0 %v1839_v25  ;;  %688 = vmatpush1.bf16.msra.mxu1 %v1773_v14 }
 0x26c   :  { %648 = vmatprep.subr.bf16.mxu0 %v1851_v27  ;;  %689 = vmatprep.subr.bf16.mxu1 %v1785_v16 }
 0x26f   :  { %649 = vmatpush1.bf16.msra.mxu0 %v1858_v28  ;;  %690 = vmatpush1.bf16.msra.mxu1 %v1797_v18 }
 0x270   :  { %650 = vmatprep.subr.bf16.mxu0 %v1865_v29  ;;  %691 = vmatprep.subr.bf16.mxu1 %v1809_v20 }
 0x273   :  { %651 = vmatpush1.bf16.msra.mxu0 %v1872_v31  ;;  %692 = vmatpush1.bf16.msra.mxu1 %v1821_v22 }
 0x274   :  { %652 = vmatprep.subr.bf16.mxu0 %v1878_v32  ;;  %693 = vmatprep.subr.bf16.mxu1 %v1833_v24 }
 0x277   :  { %653 = vmatpush1.bf16.msra.mxu0 %v1887_v33  ;;  %694 = vmatpush1.bf16.msra.mxu1 %v1845_v26 }
 0x278   :  { %777 = vmatprep.subr.bf16.mxu0 %v1749_v10  ;;  %818 = vmatprep.subr.bf16.mxu1 %v1696_v0 }
 0x32d   :  { %v533_v49 = vpop.f32.mrb[8].mxu0  ;;  %v574_v50 = vpop.f32.mrb[8].mxu1 }
 0x32e   :  { %v583_v51 = vadd.f32 %v1388_v47, %v574_v50  ;;  %v535_v52 = vpop.f32.mrb[9].mxu0  ;;  %v576_v53 = vpop.f32.mrb[9].mxu1 }
 0x32f   :  { %v537_v54 = vpop.f32.mrb[10].mxu0  ;;  %v578_v56 = vpop.f32.mrb[10].mxu1  ;;  %v584_v58 = vadd.f32 %v1389_v40, %v576_v53 }
 0x330   :  { %v599_v60 = vand.u32 2147483647, %v583_v51  ;;  %v538_v61 = vpop.f32.mrb[11].mxu0  ;;  %v579_v62 = vpop.f32.mrb[11].mxu1  ;;  %v1390_v35 = vmul.f32 -1.442695, %v583_v51 }
 0x331   :  { %v598_v44 = vmin.f32 %v583_v51, 0.0  ;;  %v1391_v50 = vmul.f32 -1.442695, %v584_v58  ;;  %v1386_v54 = vld [vmem:[%s2549_s0 + $0x40] sm:$0xff] }
 0x332   :  { %v600_v59 = vsub.f32 0.0, %v599_v60  ;;  %v582_v60 = vadd.f32 %v1387_v46, %v535_v52  ;;  %v581_v51 = vadd.f32 %v1386_v54, %v533_v49 }
 0x334   :  { %v601_v57 = vmul.f32 1.442695, %v600_v59 }
 0x336   :  { %1526 = vpow2.f32 %v601_v57 }
 0x340   :  { %v1527_v30 = vpop.eup %1526 }
 0x341   :  { %v603_v34 = vadd.f32 1.0, %v1527_v30  ;;  %v606_v38 = vmul.f32 -0.5, %v1527_v30  ;;  %v609_v36 = vand.u32 2147483647, %v1527_v30 }
 0x343   :  { %1528 = vlog2.f32 %v603_v34  ;;  %v607_v39 = vadd.f32 1.0, %v606_v38  ;;  %vm610_vm2 = vcmp.lt.f32.partialorder %v609_v36, 0.0004427343 }
 0x344   :  { %1530 = vpow2.f32 %v1390_v35 }
 0x345   :  { %v608_v48 = vmul.f32 %v1527_v30, %v607_v39  ;;  %1532 = vpow2.f32 %v1391_v50 }
 0x34d   :  { %v1529_v41 = vpop.eup %1528 }
 0x34e   :  { %v605_v37 = vmul.f32 0.6931472, %v1529_v41  ;;  %v1531_v45 = vpop.eup %1530 }
 0x34f   :  { %v589_v56 = vadd.f32 1.0, %v1531_v45  ;;  %v1533_v57 = vpop.eup %1532 }
 0x350   :  { %v611_v43 = vsel %vm610_vm2, %v608_v48, %v605_v37  ;;  %v595_v34 = vadd.f32 1.0, %v1533_v57  ;;  %v1397_v37 = vld [vmem:[%s2549_s0 + $0x70] sm:$0xff] }
 0x351   :  { %v612_v47 = vsub.f32 %v598_v44, %v611_v43  ;;  %1534 = vrcp.f32 %v589_v56 }
 0x352   :  { %1536 = vtanh.f32 %v581_v51 }
 0x353   :  { %v613_v53 = vadd.f32 %v612_v47, %v2002_v63 }
 0x355   :  { %v2071_v61 = vmax.f32 %v613_v53, %v582_v60 }
 0x357   :  { %v615_v62 = vsub.f32 %v582_v60, %v2071_v61 }
 0x359   :  { %v616_v59 = vmul.f32 1.442695, %v615_v62 }
 0x35b   :  { %1538 = vpow2.f32 %v616_v59  ;;  %v1535_v30 = vpop.eup %1534 }
 0x35c   :  { %v1537_v35 = vpop.eup %1536  ;;  %v621_v38 = vmul.f32 %v1535_v30, %v2006_v42  ;;  %1540 = vrcp.f32 %v595_v34  ;;  %v618_v63 = vmul.f32 %v1535_v30, %v2014_v55  ;;  %v1398_v34 = vld [vmem:[%s2549_s0 + $0x78] sm:$0xff] }
 0x365   :  { %v1539_v39 = vpop.eup %1538 }
 0x366   :  { %v619_v52 = vmul.f32 %v1539_v39, %v1537_v35  ;;  %v2075_v40 = vadd.f32 %v1539_v39, %v621_v38  ;;  %v1541_v42 = vpop.eup %1540 }
 0x368   :  { %1542 = vrcp.f32 %v2075_v40  ;;  %1394 = vst [vmem:[%s2550_s4 + $0x10] sm:$0xff] %v2075_v40  ;;  %v2083_v49 = vadd.f32 %v619_v52, %v618_v63 }
 0x36a   :  { %1393 = vst [vmem:[%s2551_s3 + $0x10] sm:$0xff] %v2083_v49  ;;  %v623_v36 = vmul.f32 %v1541_v42, %v2083_v49 }
 0x372   :  { %v1543_v41 = vpop.eup %1542 }
 0x373   :  { %v625_v58 = vmul.f32 %v1543_v41, %v623_v36  ;;  %v1396_v41 = vld [vmem:[%s2549_s0 + $0x68] sm:$0xff] }
 0x375   :  { %1392 = vst [vmem:[%s2552_s2 + $0x10] sm:$0xff] %v625_v58  ;;  %v637_v55 = vpack.c.bf16 %v625_v58, %v625_v58 }
 0x377   :  { %671 = vmatmul.mubr.bf16.vlgmr.msra.gmra.mrb[12].mxu0 %v637_v55  ;;  %712 = vmatmul.mubr.bf16.vlgmr.msra.gmra.mrb[12].mxu1 %v637_v55 }
 0x378   :  { %778 = vmatpush1.bf16.msra.mxu0 %v1754_v11  ;;  %819 = vmatpush1.bf16.msra.mxu1 %v1703_v2 }
 0x379   :  { %779 = vmatprep.subr.bf16.mxu0 %v1760_v12  ;;  %820 = vmatprep.subr.bf16.mxu1 %v1709_v3 }
 0x37a   :  { %809 = vmatprep.mubr.bf16.mxu0 %v1666_v1  ;;  %850 = vmatprep.mubr.bf16.mxu1 %v1666_v1 }
 0x37c   :  { %780 = vmatpush1.bf16.msra.mxu0 %v1767_v13  ;;  %821 = vmatpush1.bf16.msra.mxu1 %v1715_v4 }
 0x37d   :  { %781 = vmatprep.subr.bf16.mxu0 %v1779_v15  ;;  %822 = vmatprep.subr.bf16.mxu1 %v1721_v5 }
 0x380   :  { %782 = vmatpush1.bf16.msra.mxu0 %v1791_v17  ;;  %823 = vmatpush1.bf16.msra.mxu1 %v1727_v6 }
 0x381   :  { %783 = vmatprep.subr.bf16.mxu0 %v1803_v19  ;;  %824 = vmatprep.subr.bf16.mxu1 %v1733_v7 }
 0x384   :  { %784 = vmatpush1.bf16.msra.mxu0 %v1815_v21  ;;  %825 = vmatpush1.bf16.msra.mxu1 %v1738_v8 }
 0x385   :  { %785 = vmatprep.subr.bf16.mxu0 %v1827_v23  ;;  %826 = vmatprep.subr.bf16.mxu1 %v1743_v9 }
 0x388   :  { %786 = vmatpush1.bf16.msra.mxu0 %v1839_v25  ;;  %827 = vmatpush1.bf16.msra.mxu1 %v1773_v14 }
 0x389   :  { %787 = vmatprep.subr.bf16.mxu0 %v1851_v27  ;;  %828 = vmatprep.subr.bf16.mxu1 %v1785_v16 }
 0x38c   :  { %788 = vmatpush1.bf16.msra.mxu0 %v1858_v28  ;;  %829 = vmatpush1.bf16.msra.mxu1 %v1797_v18 }
 0x38d   :  { %789 = vmatprep.subr.bf16.mxu0 %v1865_v29  ;;  %830 = vmatprep.subr.bf16.mxu1 %v1809_v20 }
 0x390   :  { %790 = vmatpush1.bf16.msra.mxu0 %v1872_v31  ;;  %831 = vmatpush1.bf16.msra.mxu1 %v1821_v22 }
 0x391   :  { %791 = vmatprep.subr.bf16.mxu0 %v1878_v32  ;;  %832 = vmatprep.subr.bf16.mxu1 %v1833_v24 }
 0x394   :  { %792 = vmatpush1.bf16.msra.mxu0 %v1887_v33  ;;  %833 = vmatpush1.bf16.msra.mxu1 %v1845_v26 }
 0x395   :  { %916 = vmatprep.subr.bf16.mxu0 %v1749_v10  ;;  %957 = vmatprep.subr.bf16.mxu1 %v1696_v0 }
 0x44a   :  { %v672_v48 = vpop.f32.mrb[12].mxu0  ;;  %v713_v44 = vpop.f32.mrb[12].mxu1 }
 0x44b   :  { %v722_v45 = vadd.f32 %v1397_v37, %v713_v44  ;;  %v674_v46 = vpop.f32.mrb[13].mxu0  ;;  %v715_v43 = vpop.f32.mrb[13].mxu1  ;;  %v1395_v44 = vld [vmem:[%s2549_s0 + $0x60] sm:$0xff] }
 0x44c   :  { %v676_v47 = vpop.f32.mrb[14].mxu0  ;;  %v717_v50 = vpop.f32.mrb[14].mxu1  ;;  %v723_v39 = vadd.f32 %v1398_v34, %v715_v43 }
 0x44d   :  { %v738_v54 = vand.u32 2147483647, %v722_v45  ;;  %v677_v56 = vpop.f32.mrb[15].mxu0  ;;  %v718_v60 = vpop.f32.mrb[15].mxu1  ;;  %v1399_v0 = vmul.f32 -1.442695, %v722_v45  ;;  %v721_v50 = vadd.f32 %v1396_v41, %v674_v46 }
 0x44e   :  { %v737_v42 = vmin.f32 %v722_v45, 0.0  ;;  %v1400_v37 = vmul.f32 -1.442695, %v723_v39  ;;  %v720_v45 = vadd.f32 %v1395_v44, %v672_v48  ;;  %v1404_v39 = vld [vmem:[%s2549_s0 + $0x80] sm:$0xff] }
 0x44f   :  { %v739_v53 = vsub.f32 0.0, %v738_v54 }
 0x451   :  { %v740_v51 = vmul.f32 1.442695, %v739_v53 }
 0x453   :  { %1544 = vpow2.f32 %v740_v51 }
 0x45d   :  { %v1545_v62 = vpop.eup %1544 }
 0x45e   :  { %v742_v59 = vadd.f32 1.0, %v1545_v62  ;;  %v745_v57 = vmul.f32 -0.5, %v1545_v62  ;;  %v748_v35 = vand.u32 2147483647, %v1545_v62 }
 0x460   :  { %1546 = vlog2.f32 %v742_v59  ;;  %v746_v30 = vadd.f32 1.0, %v745_v57  ;;  %vm749_vm3 = vcmp.lt.f32.partialorder %v748_v35, 0.0004427343 }
 0x461   :  { %1548 = vpow2.f32 %v1399_v0 }
 0x462   :  { %v747_v63 = vmul.f32 %v1545_v62, %v746_v30  ;;  %1550 = vpow2.f32 %v1400_v37 }
 0x46a   :  { %v1547_v38 = vpop.eup %1546 }
 0x46b   :  { %v744_v52 = vmul.f32 0.6931472, %v1547_v38  ;;  %v1549_v36 = vpop.eup %1548 }
 0x46c   :  { %v728_v47 = vadd.f32 1.0, %v1549_v36  ;;  %v1551_v53 = vpop.eup %1550 }
 0x46d   :  { %v750_v58 = vsel %vm749_vm3, %v747_v63, %v744_v52  ;;  %v734_v62 = vadd.f32 1.0, %v1551_v53 }
 0x46e   :  { %v751_v55 = vsub.f32 %v737_v42, %v750_v58  ;;  %1552 = vrcp.f32 %v728_v47 }
 0x46f   :  { %1554 = vtanh.f32 %v720_v45 }
 0x470   :  { %v752_v43 = vadd.f32 %v751_v55, %v2071_v61 }
 0x472   :  { %v2140_v54 = vmax.f32 %v752_v43, %v721_v50 }
 0x474   :  { %v754_v56 = vsub.f32 %v721_v50, %v2140_v54 }
 0x476   :  { %v755_v60 = vmul.f32 1.442695, %v754_v56 }
 0x478   :  { %1556 = vpow2.f32 %v755_v60  ;;  %v1553_v51 = vpop.eup %1552 }
 0x479   :  { %v1555_v59 = vpop.eup %1554  ;;  %v760_v0 = vmul.f32 %v1553_v51, %v2075_v40  ;;  %1558 = vrcp.f32 %v734_v62  ;;  %v757_v61 = vmul.f32 %v1553_v51, %v2083_v49 }
 0x482   :  { %v1557_v57 = vpop.eup %1556 }
 0x483   :  { %v758_v46 = vmul.f32 %v1557_v57, %v1555_v59  ;;  %v2144_v30 = vadd.f32 %v1557_v57, %v760_v0  ;;  %v1559_v40 = vpop.eup %1558 }
 0x485   :  { %1560 = vrcp.f32 %v2144_v30  ;;  %1403 = vst [vmem:[%s2550_s4 + $0x18] sm:$0xff] %v2144_v30  ;;  %v2152_v48 = vadd.f32 %v758_v46, %v757_v61  ;;  %v2239_v46 = vld [vmem:[%s2548_s1] ss:$16 sps:$4 sm:$0xff]   ;;  %v2251_v61 = vld [vmem:[%s2548_s1 + $0x24] ss:$16 sps:$4 sm:$0xff]  }
 0x487   :  { %1402 = vst [vmem:[%s2551_s3 + $0x18] sm:$0xff] %v2152_v48  ;;  %v762_v34 = vmul.f32 %v1559_v40, %v2152_v48  ;;  %v2265_v40 = vld [vmem:[%s2548_s1 + $0x20] ss:$16 sps:$4 sm:$0xff]  }
 0x48f   :  { %v1561_v35 = vpop.eup %1560 }
 0x490   :  { %v764_v38 = vmul.f32 %v1561_v35, %v762_v34  ;;  %v2271_v34 = vld [vmem:[%s2548_s1 + $0x28] ss:$16 sps:$4 sm:$0xff]   ;;  %v2277_v35 = vld [vmem:[%s2548_s1 + $0x44] ss:$16 sps:$4 sm:$0xff]  }
 0x492   :  { %1401 = vst [vmem:[%s2552_s2 + $0x18] sm:$0xff] %v764_v38  ;;  %v776_v49 = vpack.c.bf16 %v764_v38, %v764_v38  ;;  %v2283_v38 = vld [vmem:[%s2548_s1 + $0x4c] ss:$16 sps:$4 sm:$0xff]  }
 0x494   :  { %810 = vmatmul.mubr.bf16.vlgmr.msra.gmra.mrb[16].mxu0 %v776_v49  ;;  %851 = vmatmul.mubr.bf16.vlgmr.msra.gmra.mrb[16].mxu1 %v776_v49  ;;  %v2289_v49 = vld [vmem:[%s2548_s1 + $0x40] ss:$16 sps:$4 sm:$0xff]  }
 0x495   :  { %917 = vmatpush1.bf16.msra.mxu0 %v1754_v11  ;;  %958 = vmatpush1.bf16.msra.mxu1 %v1703_v2  ;;  %v2198_v2 = vld [vmem:[%s2548_s1 + $0xc] ss:$16 sps:$4 sm:$0xff]  }
 0x496   :  { %918 = vmatprep.subr.bf16.mxu0 %v1760_v12  ;;  %959 = vmatprep.subr.bf16.mxu1 %v1709_v3  ;;  %v1406_v3 = vld [vmem:[%s2549_s0 + $0x90] sm:$0xff] }
 0x497   :  { %948 = vmatprep.mubr.bf16.mxu0 %v1666_v1  ;;  %989 = vmatprep.mubr.bf16.mxu1 %v1666_v1 }
 0x499   :  { %919 = vmatpush1.bf16.msra.mxu0 %v1767_v13  ;;  %960 = vmatpush1.bf16.msra.mxu1 %v1715_v4 }
 0x49a   :  { %920 = vmatprep.subr.bf16.mxu0 %v1779_v15  ;;  %961 = vmatprep.subr.bf16.mxu1 %v1721_v5 }
 0x49d   :  { %921 = vmatpush1.bf16.msra.mxu0 %v1791_v17  ;;  %962 = vmatpush1.bf16.msra.mxu1 %v1727_v6 }
 0x49e   :  { %922 = vmatprep.subr.bf16.mxu0 %v1803_v19  ;;  %963 = vmatprep.subr.bf16.mxu1 %v1733_v7 }
 0x4a1   :  { %923 = vmatpush1.bf16.msra.mxu0 %v1815_v21  ;;  %964 = vmatpush1.bf16.msra.mxu1 %v1738_v8  ;;  %v1407_v21 = vld [vmem:[%s2549_s0 + $0x98] sm:$0xff] }
 0x4a2   :  { %924 = vmatprep.subr.bf16.mxu0 %v1827_v23  ;;  %965 = vmatprep.subr.bf16.mxu1 %v1743_v9 }
 0x4a5   :  { %925 = vmatpush1.bf16.msra.mxu0 %v1839_v25  ;;  %966 = vmatpush1.bf16.msra.mxu1 %v1773_v14 }
 0x4a6   :  { %926 = vmatprep.subr.bf16.mxu0 %v1851_v27  ;;  %967 = vmatprep.subr.bf16.mxu1 %v1785_v16 }
 0x4a9   :  { %927 = vmatpush1.bf16.msra.mxu0 %v1858_v28  ;;  %968 = vmatpush1.bf16.msra.mxu1 %v1797_v18 }
 0x4aa   :  { %928 = vmatprep.subr.bf16.mxu0 %v1865_v29  ;;  %969 = vmatprep.subr.bf16.mxu1 %v1809_v20  ;;  %v1405_v29 = vld [vmem:[%s2549_s0 + $0x88] sm:$0xff] }
 0x4ad   :  { %929 = vmatpush1.bf16.msra.mxu0 %v1872_v31  ;;  %970 = vmatpush1.bf16.msra.mxu1 %v1821_v22 }
 0x4ae   :  { %930 = vmatprep.subr.bf16.mxu0 %v1878_v32  ;;  %971 = vmatprep.subr.bf16.mxu1 %v1833_v24 }
 0x4b1   :  { %931 = vmatpush1.bf16.msra.mxu0 %v1887_v33  ;;  %972 = vmatpush1.bf16.msra.mxu1 %v1845_v26 }
 0x4b2   :  { %1055 = vmatprep.subr.bf16.mxu0 %v1749_v10  ;;  %1096 = vmatprep.subr.bf16.mxu1 %v2198_v2 }
 0x567   :  { %v811_v4 = vpop.f32.mrb[16].mxu0  ;;  %v852_v5 = vpop.f32.mrb[16].mxu1 }
 0x568   :  { %v861_v6 = vadd.f32 %v1406_v3, %v852_v5  ;;  %v813_v7 = vpop.f32.mrb[17].mxu0  ;;  %v854_v8 = vpop.f32.mrb[17].mxu1  ;;  %v859_v41 = vadd.f32 %v1404_v39, %v811_v4  ;;  %v2295_v3 = vld [vmem:[%s2548_s1 + $0x48] ss:$16 sps:$4 sm:$0xff]   ;;  %v2301_v4 = vld [vmem:[%s2548_s1 + $0x64] ss:$16 sps:$4 sm:$0xff]  }
 0x569   :  { %v815_v9 = vpop.f32.mrb[18].mxu0  ;;  %v856_v11 = vpop.f32.mrb[18].mxu1  ;;  %v862_v24 = vadd.f32 %v1407_v21, %v854_v8  ;;  %v860_v63 = vadd.f32 %v1405_v29, %v813_v7  ;;  %v2307_v5 = vld [vmem:[%s2548_s1 + $0x6c] ss:$16 sps:$4 sm:$0xff]   ;;  %v2319_v7 = vld [vmem:[%s2548_s1 + $0x68] ss:$16 sps:$4 sm:$0xff]  }
 0x56a   :  { %v877_v12 = vand.u32 2147483647, %v861_v6  ;;  %v816_v10 = vpop.f32.mrb[19].mxu0  ;;  %v857_v13 = vpop.f32.mrb[19].mxu1  ;;  %v1408_v18 = vmul.f32 -1.442695, %v861_v6 }
 0x56b   :  { %v876_v27 = vmin.f32 %v861_v6, 0.0  ;;  %v1409_v33 = vmul.f32 -1.442695, %v862_v24  ;;  %v2313_v6 = vld [vmem:[%s2548_s1 + $0x60] ss:$16 sps:$4 sm:$0xff]  }
 0x56c   :  { %v878_v14 = vsub.f32 0.0, %v877_v12  ;;  %v2325_v8 = vld [vmem:[%s2548_s1 + $0x84] ss:$16 sps:$4 sm:$0xff]   ;;  %v2331_v9 = vld [vmem:[%s2548_s1 + $0x8c] ss:$16 sps:$4 sm:$0xff]  }
 0x56d   :  { %v2337_v11 = vld [vmem:[%s2548_s1 + $0x80] ss:$16 sps:$4 sm:$0xff]   ;;  %v2343_v12 = vld [vmem:[%s2548_s1 + $0x88] ss:$16 sps:$4 sm:$0xff]   ;;  %v2349_v10 = vld [vmem:[%s2548_s1 + $0xa4] ss:$16 sps:$4 sm:$0xff]  }
 0x56e   :  { %v879_v15 = vmul.f32 1.442695, %v878_v14  ;;  %v2355_v13 = vld [vmem:[%s2548_s1 + $0xac] ss:$16 sps:$4 sm:$0xff]   ;;  %v2361_v14 = vld [vmem:[%s2548_s1 + $0xa0] ss:$16 sps:$4 sm:$0xff]  }
 0x56f   :  { %v2403_v21 = vld [vmem:[%s2548_s1 + $0xec] ss:$16 sps:$4 sm:$0xff]   ;;  %v1665_v24 = vld [vmem:[%s2548_s1 + $0x4] ss:$16 sps:$4 sm:$0xff]  }
 0x570   :  { %1562 = vpow2.f32 %v879_v15  ;;  %v2367_v15 = vld [vmem:[%s2548_s1 + $0xa8] ss:$16 sps:$4 sm:$0xff]  }
 0x57a   :  { %v1563_v16 = vpop.eup %1562 }
 0x57b   :  { %v881_v17 = vadd.f32 1.0, %v1563_v16  ;;  %v884_v19 = vmul.f32 -0.5, %v1563_v16  ;;  %v887_v22 = vand.u32 2147483647, %v1563_v16 }
 0x57d   :  { %1564 = vlog2.f32 %v881_v17  ;;  %v885_v20 = vadd.f32 1.0, %v884_v19  ;;  %vm888_vm4 = vcmp.lt.f32.partialorder %v887_v22, 0.0004427343  ;;  %v2379_v17 = vld [vmem:[%s2548_s1 + $0xcc] ss:$16 sps:$4 sm:$0xff]  }
 0x57e   :  { %1566 = vpow2.f32 %v1408_v18  ;;  %v2385_v18 = vld [vmem:[%s2548_s1 + $0xc0] ss:$16 sps:$4 sm:$0xff]   ;;  %v2391_v19 = vld [vmem:[%s2548_s1 + $0xc8] ss:$16 sps:$4 sm:$0xff]  }
 0x57f   :  { %v886_v26 = vmul.f32 %v1563_v16, %v885_v20  ;;  %1568 = vpow2.f32 %v1409_v33  ;;  %v2373_v16 = vld [vmem:[%s2548_s1 + $0xc4] ss:$16 sps:$4 sm:$0xff]   ;;  %v2409_v22 = vld [vmem:[%s2548_s1 + $0xe0] ss:$16 sps:$4 sm:$0xff]  }
 0x580   :  { %v2397_v20 = vld [vmem:[%s2548_s1 + $0xe4] ss:$16 sps:$4 sm:$0xff]  }
 0x587   :  { %v1565_v23 = vpop.eup %1564 }
 0x588   :  { %v883_v25 = vmul.f32 0.6931472, %v1565_v23  ;;  %v1567_v28 = vpop.eup %1566  ;;  %v2415_v23 = vld [vmem:[%s2548_s1 + $0xe8] ss:$16 sps:$4 sm:$0xff]  }
 0x589   :  { %v867_v52 = vadd.f32 1.0, %v1567_v28  ;;  %v1569_v37 = vpop.eup %1568 }
 0x58a   :  { %v889_v31 = vsel %vm888_vm4, %v886_v26, %v883_v25  ;;  %v873_v47 = vadd.f32 1.0, %v1569_v37  ;;  %v1415_v25 = vld [vmem:[%s2549_s0 + $0xb0] sm:$0xff] }
 0x58b   :  { %v890_v32 = vsub.f32 %v876_v27, %v889_v31  ;;  %1570 = vrcp.f32 %v867_v52 }
 0x58c   :  { %1572 = vtanh.f32 %v859_v41 }
 0x58d   :  { %v891_v42 = vadd.f32 %v890_v32, %v2140_v54 }
 0x58f   :  { %v2214_v36 = vmax.f32 %v891_v42, %v860_v63 }
 0x591   :  { %v893_v58 = vsub.f32 %v860_v63, %v2214_v36 }
 0x593   :  { %v894_v55 = vmul.f32 1.442695, %v893_v58 }
 0x595   :  { %1574 = vpow2.f32 %v894_v55  ;;  %v1571_v44 = vpop.eup %1570 }
 0x596   :  { %v1573_v50 = vpop.eup %1572  ;;  %v899_v43 = vmul.f32 %v1571_v44, %v2144_v30  ;;  %1576 = vrcp.f32 %v873_v47  ;;  %v896_v54 = vmul.f32 %v1571_v44, %v2152_v48  ;;  %v2245_v30 = vld [vmem:[%s2548_s1 + $0x8] ss:$16 sps:$4 sm:$0xff]   ;;  %v2257_v48 = vld [vmem:[%s2548_s1 + $0x2c] ss:$16 sps:$4 sm:$0xff]  }
 0x597   :  { %v1416_v47 = vld [vmem:[%s2549_s0 + $0xb8] sm:$0xff] }
 0x59f   :  { %v1575_v45 = vpop.eup %1574 }
 0x5a0   :  { %v897_v56 = vmul.f32 %v1575_v45, %v1573_v50  ;;  %v2218_v60 = vadd.f32 %v1575_v45, %v899_v43  ;;  %v1577_v51 = vpop.eup %1576 }
 0x5a2   :  { %1578 = vrcp.f32 %v2218_v60  ;;  %1412 = vst [vmem:[%s2550_s4 + $0x20] sm:$0xff] %v2218_v60  ;;  %v2226_v53 = vadd.f32 %v897_v56, %v896_v54 }
 0x5a4   :  { %1411 = vst [vmem:[%s2551_s3 + $0x20] sm:$0xff] %v2226_v53  ;;  %v901_v62 = vmul.f32 %v1577_v51, %v2226_v53 }
 0x5ac   :  { %v1579_v59 = vpop.eup %1578 }
 0x5ad   :  { %v903_v0 = vmul.f32 %v1579_v59, %v901_v62  ;;  %v1414_v59 = vld [vmem:[%s2549_s0 + $0xa8] sm:$0xff] }
 0x5af   :  { %1410 = vst [vmem:[%s2552_s2 + $0x20] sm:$0xff] %v903_v0  ;;  %v915_v57 = vpack.c.bf16 %v903_v0, %v903_v0 }
 0x5b1   :  { %949 = vmatmul.mubr.bf16.vlgmr.msra.gmra.mrb[20].mxu0 %v915_v57  ;;  %990 = vmatmul.mubr.bf16.vlgmr.msra.gmra.mrb[20].mxu1 %v915_v57 }
 0x5b2   :  { %1056 = vmatpush1.bf16.msra.mxu0 %v2239_v46  ;;  %1097 = vmatpush1.bf16.msra.mxu1 %v2245_v30 }
 0x5b3   :  { %1057 = vmatprep.subr.bf16.mxu0 %v2251_v61  ;;  %1098 = vmatprep.subr.bf16.mxu1 %v2257_v48 }
 0x5b4   :  { %1087 = vmatprep.mubr.bf16.mxu0 %v1666_v1  ;;  %1128 = vmatprep.mubr.bf16.mxu1 %v1666_v1 }
 0x5b6   :  { %1058 = vmatpush1.bf16.msra.mxu0 %v2265_v40  ;;  %1099 = vmatpush1.bf16.msra.mxu1 %v2271_v34 }
 0x5b7   :  { %1059 = vmatprep.subr.bf16.mxu0 %v2277_v35  ;;  %1100 = vmatprep.subr.bf16.mxu1 %v2283_v38 }
 0x5ba   :  { %1060 = vmatpush1.bf16.msra.mxu0 %v2289_v49  ;;  %1101 = vmatpush1.bf16.msra.mxu1 %v2295_v3 }
 0x5bb   :  { %1061 = vmatprep.subr.bf16.mxu0 %v2301_v4  ;;  %1102 = vmatprep.subr.bf16.mxu1 %v2307_v5 }
 0x5be   :  { %1062 = vmatpush1.bf16.msra.mxu0 %v2313_v6  ;;  %1103 = vmatpush1.bf16.msra.mxu1 %v2319_v7 }
 0x5bf   :  { %1063 = vmatprep.subr.bf16.mxu0 %v2325_v8  ;;  %1104 = vmatprep.subr.bf16.mxu1 %v2331_v9 }
 0x5c2   :  { %1064 = vmatpush1.bf16.msra.mxu0 %v2337_v11  ;;  %1105 = vmatpush1.bf16.msra.mxu1 %v2343_v12 }
 0x5c3   :  { %1065 = vmatprep.subr.bf16.mxu0 %v2349_v10  ;;  %1106 = vmatprep.subr.bf16.mxu1 %v2355_v13 }
 0x5c6   :  { %1066 = vmatpush1.bf16.msra.mxu0 %v2361_v14  ;;  %1107 = vmatpush1.bf16.msra.mxu1 %v2367_v15 }
 0x5c7   :  { %1067 = vmatprep.subr.bf16.mxu0 %v2373_v16  ;;  %1108 = vmatprep.subr.bf16.mxu1 %v2379_v17 }
 0x5ca   :  { %1068 = vmatpush1.bf16.msra.mxu0 %v2385_v18  ;;  %1109 = vmatpush1.bf16.msra.mxu1 %v2391_v19 }
 0x5cb   :  { %1069 = vmatprep.subr.bf16.mxu0 %v2397_v20  ;;  %1110 = vmatprep.subr.bf16.mxu1 %v2403_v21 }
 0x5ce   :  { %1070 = vmatpush1.bf16.msra.mxu0 %v2409_v22  ;;  %1111 = vmatpush1.bf16.msra.mxu1 %v2415_v23 }
 0x5cf   :  { %1194 = vmatprep.subr.bf16.mxu0 %v1665_v24  ;;  %1235 = vmatprep.subr.bf16.mxu1 %v2198_v2 }
 0x684   :  { %v950_v26 = vpop.f32.mrb[20].mxu0  ;;  %v991_v27 = vpop.f32.mrb[20].mxu1 }
 0x685   :  { %v1000_v28 = vadd.f32 %v1415_v25, %v991_v27  ;;  %v952_v29 = vpop.f32.mrb[21].mxu0  ;;  %v993_v31 = vpop.f32.mrb[21].mxu1  ;;  %v1413_v25 = vld [vmem:[%s2549_s0 + $0xa0] sm:$0xff] }
 0x686   :  { %v954_v32 = vpop.f32.mrb[22].mxu0  ;;  %v995_v33 = vpop.f32.mrb[22].mxu1  ;;  %v1001_v45 = vadd.f32 %v1416_v47, %v993_v31 }
 0x687   :  { %v1016_v39 = vand.u32 2147483647, %v1000_v28  ;;  %v955_v52 = vpop.f32.mrb[23].mxu0  ;;  %v996_v63 = vpop.f32.mrb[23].mxu1  ;;  %v1417_v2 = vmul.f32 -1.442695, %v1000_v28  ;;  %v999_v32 = vadd.f32 %v1414_v59, %v952_v29 }
 0x688   :  { %v1015_v51 = vmin.f32 %v1000_v28, 0.0  ;;  %v1418_v24 = vmul.f32 -1.442695, %v1001_v45  ;;  %v998_v28 = vadd.f32 %v1413_v25, %v950_v26 }
 0x689   :  { %v1017_v42 = vsub.f32 0.0, %v1016_v39 }
 0x68b   :  { %v1018_v41 = vmul.f32 1.442695, %v1017_v42 }
 0x68d   :  { %1580 = vpow2.f32 %v1018_v41 }
 0x697   :  { %v1581_v58 = vpop.eup %1580 }
 0x698   :  { %v1020_v55 = vadd.f32 1.0, %v1581_v58  ;;  %v1023_v37 = vmul.f32 -0.5, %v1581_v58  ;;  %v1026_v50 = vand.u32 2147483647, %v1581_v58 }
 0x69a   :  { %1582 = vlog2.f32 %v1020_v55  ;;  %v1024_v44 = vadd.f32 1.0, %v1023_v37  ;;  %vm1027_vm5 = vcmp.lt.f32.partialorder %v1026_v50, 0.0004427343 }
 0x69b   :  { %1584 = vpow2.f32 %v1417_v2 }
 0x69c   :  { %v1025_v54 = vmul.f32 %v1581_v58, %v1024_v44  ;;  %1586 = vpow2.f32 %v1418_v24 }
 0x6a4   :  { %v1583_v43 = vpop.eup %1582 }
 0x6a5   :  { %v1022_v56 = vmul.f32 0.6931472, %v1583_v43  ;;  %v1585_v62 = vpop.eup %1584 }
 0x6a6   :  { %v1006_v27 = vadd.f32 1.0, %v1585_v62  ;;  %v1587_v63 = vpop.eup %1586 }
 0x6a7   :  { %v1028_v0 = vsel %vm1027_vm5, %v1025_v54, %v1022_v56  ;;  %v1012_v41 = vadd.f32 1.0, %v1587_v63 }
 0x6a8   :  { %v1029_v57 = vsub.f32 %v1015_v51, %v1028_v0  ;;  %1588 = vrcp.f32 %v1006_v27 }
 0x6a9   :  { %1590 = vtanh.f32 %v998_v28 }
 0x6aa   :  { %v1030_v31 = vadd.f32 %v1029_v57, %v2214_v36 }
 0x6ac   :  { %v2435_v33 = vmax.f32 %v1030_v31, %v999_v32 }
 0x6ae   :  { %v1032_v39 = vsub.f32 %v999_v32, %v2435_v33 }
 0x6b0   :  { %v1033_v52 = vmul.f32 1.442695, %v1032_v39 }
 0x6b2   :  { %1592 = vpow2.f32 %v1033_v52  ;;  %v1589_v42 = vpop.eup %1588 }
 0x6b3   :  { %v1591_v58 = vpop.eup %1590  ;;  %v1038_v55 = vmul.f32 %v1589_v42, %v2218_v60  ;;  %1594 = vrcp.f32 %v1012_v41  ;;  %v1035_v36 = vmul.f32 %v1589_v42, %v2226_v53 }
 0x6bc   :  { %v1593_v2 = vpop.eup %1592 }
 0x6bd   :  { %v1036_v29 = vmul.f32 %v1593_v2, %v1591_v58  ;;  %v2439_v37 = vadd.f32 %v1593_v2, %v1038_v55  ;;  %v1595_v60 = vpop.eup %1594  ;;  %v1433_v55 = vld [vmem:[%s2549_s0 + $0xf0] sm:$0xff] }
 0x6bf   :  { %1596 = vrcp.f32 %v2439_v37  ;;  %1421 = vst [vmem:[%s2550_s4 + $0x28] sm:$0xff] %v2439_v37  ;;  %v2447_v26 = vadd.f32 %v1036_v29, %v1035_v36 }
 0x6c1   :  { %1420 = vst [vmem:[%s2551_s3 + $0x28] sm:$0xff] %v2447_v26  ;;  %v1040_v44 = vmul.f32 %v1595_v60, %v2447_v26 }
 0x6c9   :  { %v1597_v47 = vpop.eup %1596 }
 0x6ca   :  { %v1042_v50 = vmul.f32 %v1597_v47, %v1040_v44 }
 0x6cc   :  { %1419 = vst [vmem:[%s2552_s2 + $0x28] sm:$0xff] %v1042_v50  ;;  %v1054_v53 = vpack.c.bf16 %v1042_v50, %v1042_v50 }
 0x6ce   :  { %1088 = vmatmul.mubr.bf16.vlgmr.msra.gmra.mrb[24].mxu0 %v1054_v53  ;;  %1129 = vmatmul.mubr.bf16.vlgmr.msra.gmra.mrb[24].mxu1 %v1054_v53 }
 0x6cf   :  { %1195 = vmatpush1.bf16.msra.mxu0 %v2239_v46  ;;  %1236 = vmatpush1.bf16.msra.mxu1 %v2245_v30 }
 0x6d0   :  { %1196 = vmatprep.subr.bf16.mxu0 %v2251_v61  ;;  %1237 = vmatprep.subr.bf16.mxu1 %v2257_v48 }
 0x6d1   :  { %1226 = vmatprep.mubr.bf16.mxu0 %v1666_v1  ;;  %1267 = vmatprep.mubr.bf16.mxu1 %v1666_v1  ;;  %v1424_v1 = vld [vmem:[%s2549_s0 + $0xd0] sm:$0xff] }
 0x6d3   :  { %1197 = vmatpush1.bf16.msra.mxu0 %v2265_v40  ;;  %1238 = vmatpush1.bf16.msra.mxu1 %v2271_v34 }
 0x6d4   :  { %1198 = vmatprep.subr.bf16.mxu0 %v2277_v35  ;;  %1239 = vmatprep.subr.bf16.mxu1 %v2283_v38 }
 0x6d7   :  { %1199 = vmatpush1.bf16.msra.mxu0 %v2289_v49  ;;  %1240 = vmatpush1.bf16.msra.mxu1 %v2295_v3 }
 0x6d8   :  { %1200 = vmatprep.subr.bf16.mxu0 %v2301_v4  ;;  %1241 = vmatprep.subr.bf16.mxu1 %v2307_v5 }
 0x6db   :  { %1201 = vmatpush1.bf16.msra.mxu0 %v2313_v6  ;;  %1242 = vmatpush1.bf16.msra.mxu1 %v2319_v7 }
 0x6dc   :  { %1202 = vmatprep.subr.bf16.mxu0 %v2325_v8  ;;  %1243 = vmatprep.subr.bf16.mxu1 %v2331_v9 }
 0x6df   :  { %1203 = vmatpush1.bf16.msra.mxu0 %v2337_v11  ;;  %1244 = vmatpush1.bf16.msra.mxu1 %v2343_v12  ;;  %v1425_v12 = vld [vmem:[%s2549_s0 + $0xd8] sm:$0xff] }
 0x6e0   :  { %1204 = vmatprep.subr.bf16.mxu0 %v2349_v10  ;;  %1245 = vmatprep.subr.bf16.mxu1 %v2355_v13 }
 0x6e3   :  { %1205 = vmatpush1.bf16.msra.mxu0 %v2361_v14  ;;  %1246 = vmatpush1.bf16.msra.mxu1 %v2367_v15 }
 0x6e4   :  { %1206 = vmatprep.subr.bf16.mxu0 %v2373_v16  ;;  %1247 = vmatprep.subr.bf16.mxu1 %v2379_v17 }
 0x6e7   :  { %1207 = vmatpush1.bf16.msra.mxu0 %v2385_v18  ;;  %1248 = vmatpush1.bf16.msra.mxu1 %v2391_v19  ;;  %v1423_v19 = vld [vmem:[%s2549_s0 + $0xc8] sm:$0xff] }
 0x6e8   :  { %1208 = vmatprep.subr.bf16.mxu0 %v2397_v20  ;;  %1249 = vmatprep.subr.bf16.mxu1 %v2403_v21 }
 0x6eb   :  { %1209 = vmatpush1.bf16.msra.mxu0 %v2409_v22  ;;  %1250 = vmatpush1.bf16.msra.mxu1 %v2415_v23  ;;  %v1422_v23 = vld [vmem:[%s2549_s0 + $0xc0] sm:$0xff] }
 0x7a1   :  { %v1089_v46 = vpop.f32.mrb[24].mxu0  ;;  %v1130_v30 = vpop.f32.mrb[24].mxu1 }
 0x7a2   :  { %v1139_v61 = vadd.f32 %v1424_v1, %v1130_v30  ;;  %v1091_v48 = vpop.f32.mrb[25].mxu0  ;;  %v1132_v40 = vpop.f32.mrb[25].mxu1  ;;  %v1137_v51 = vadd.f32 %v1422_v23, %v1089_v46 }
 0x7a3   :  { %v1093_v34 = vpop.f32.mrb[26].mxu0  ;;  %v1134_v35 = vpop.f32.mrb[26].mxu1  ;;  %v1140_v14 = vadd.f32 %v1425_v12, %v1132_v40  ;;  %v1138_v45 = vadd.f32 %v1423_v19, %v1091_v48  ;;  %v1434_v40 = vld [vmem:[%s2549_s0 + $0xf8] sm:$0xff] }
 0x7a4   :  { %v1155_v38 = vand.u32 2147483647, %v1139_v61  ;;  %v1094_v49 = vpop.f32.mrb[27].mxu0  ;;  %v1135_v3 = vpop.f32.mrb[27].mxu1  ;;  %v1426_v8 = vmul.f32 -1.442695, %v1139_v61 }
 0x7a5   :  { %v1154_v17 = vmin.f32 %v1139_v61, 0.0  ;;  %v1427_v22 = vmul.f32 -1.442695, %v1140_v14 }
 0x7a6   :  { %v1156_v4 = vsub.f32 0.0, %v1155_v38 }
 0x7a8   :  { %v1157_v5 = vmul.f32 1.442695, %v1156_v4 }
 0x7aa   :  { %1598 = vpow2.f32 %v1157_v5 }
 0x7b4   :  { %v1599_v6 = vpop.eup %1598 }
 0x7b5   :  { %v1159_v7 = vadd.f32 1.0, %v1599_v6  ;;  %v1162_v9 = vmul.f32 -0.5, %v1599_v6  ;;  %v1165_v10 = vand.u32 2147483647, %v1599_v6 }
 0x7b7   :  { %1600 = vlog2.f32 %v1159_v7  ;;  %v1163_v11 = vadd.f32 1.0, %v1162_v9  ;;  %vm1166_vm6 = vcmp.lt.f32.partialorder %v1165_v10, 0.0004427343  ;;  %v1432_v9 = vld [vmem:[%s2549_s0 + $0xe8] sm:$0xff]  ;;  %v1431_v10 = vld [vmem:[%s2549_s0 + $0xe0] sm:$0xff] }
 0x7b8   :  { %1602 = vpow2.f32 %v1426_v8 }
 0x7b9   :  { %v1164_v16 = vmul.f32 %v1599_v6, %v1163_v11  ;;  %1604 = vpow2.f32 %v1427_v22 }
 0x7c1   :  { %v1601_v13 = vpop.eup %1600 }
 0x7c2   :  { %v1161_v15 = vmul.f32 0.6931472, %v1601_v13  ;;  %v1603_v18 = vpop.eup %1602 }
 0x7c3   :  { %v1145_v43 = vadd.f32 1.0, %v1603_v18  ;;  %v1605_v0 = vpop.eup %1604 }
 0x7c4   :  { %v1167_v20 = vsel %vm1166_vm6, %v1164_v16, %v1161_v15  ;;  %v1151_v24 = vadd.f32 1.0, %v1605_v0 }
 0x7c5   :  { %v1168_v21 = vsub.f32 %v1154_v17, %v1167_v20  ;;  %1606 = vrcp.f32 %v1145_v43 }
 0x7c6   :  { %1608 = vtanh.f32 %v1137_v51 }
 0x7c7   :  { %v1169_v56 = vadd.f32 %v1168_v21, %v2435_v33 }
 0x7c9   :  { %v2502_v54 = vmax.f32 %v1169_v56, %v1138_v45 }
 0x7cb   :  { %v1171_v62 = vsub.f32 %v1138_v45, %v2502_v54 }
 0x7cd   :  { %v1172_v59 = vmul.f32 1.442695, %v1171_v62 }
 0x7cf   :  { %1610 = vpow2.f32 %v1172_v59  ;;  %v1607_v57 = vpop.eup %1606 }
 0x7d0   :  { %v1609_v25 = vpop.eup %1608  ;;  %v1177_v27 = vmul.f32 %v1607_v57, %v2439_v37  ;;  %1612 = vrcp.f32 %v1151_v24  ;;  %v1174_v33 = vmul.f32 %v1607_v57, %v2447_v26 }
 0x7d9   :  { %v1611_v32 = vpop.eup %1610 }
 0x7da   :  { %v1175_v31 = vmul.f32 %v1611_v32, %v1609_v25  ;;  %v2506_v28 = vadd.f32 %v1611_v32, %v1177_v27  ;;  %v1613_v52 = vpop.eup %1612 }
 0x7dc   :  { %1614 = vrcp.f32 %v2506_v28  ;;  %1430 = vst [vmem:[%s2550_s4 + $0x30] sm:$0xff] %v2506_v28  ;;  %v2514_v39 = vadd.f32 %v1175_v31, %v1174_v33 }
 0x7de   :  { %1429 = vst [vmem:[%s2551_s3 + $0x30] sm:$0xff] %v2514_v39  ;;  %v1179_v63 = vmul.f32 %v1613_v52, %v2514_v39 }
 0x7e6   :  { %v1615_v42 = vpop.eup %1614 }
 0x7e7   :  { %v1181_v41 = vmul.f32 %v1615_v42, %v1179_v63 }
 0x7e9   :  { %1428 = vst [vmem:[%s2552_s2 + $0x30] sm:$0xff] %v1181_v41  ;;  %v1193_v58 = vpack.c.bf16 %v1181_v41, %v1181_v41 }
 0x7eb   :  { %1227 = vmatmul.mubr.bf16.vlgmr.msra.gmra.mrb[28].mxu0 %v1193_v58  ;;  %1268 = vmatmul.mubr.bf16.vlgmr.msra.gmra.mrb[28].mxu1 %v1193_v58 }
 0x8be   :  { %v1228_v2 = vpop.f32.mrb[28].mxu0  ;;  %v1269_v29 = vpop.f32.mrb[28].mxu1 }
 0x8bf   :  { %v1278_v37 = vadd.f32 %v1433_v55, %v1269_v29  ;;  %v1230_v36 = vpop.f32.mrb[29].mxu0  ;;  %v1271_v26 = vpop.f32.mrb[29].mxu1  ;;  %v1276_v17 = vadd.f32 %v1431_v10, %v1228_v2 }
 0x8c0   :  { %v1232_v60 = vpop.f32.mrb[30].mxu0  ;;  %v1273_v44 = vpop.f32.mrb[30].mxu1  ;;  %v1279_v35 = vadd.f32 %v1434_v40, %v1271_v26  ;;  %v1277_v14 = vadd.f32 %v1432_v9, %v1230_v36 }
 0x8c1   :  { %v1294_v47 = vand.u32 2147483647, %v1278_v37  ;;  %v1233_v50 = vpop.f32.mrb[31].mxu0  ;;  %v1274_v53 = vpop.f32.mrb[31].mxu1  ;;  %v1435_v48 = vmul.f32 -1.442695, %v1278_v37 }
 0x8c2   :  { %v1436_v49 = vmul.f32 -1.442695, %v1279_v35  ;;  %v1293_v7 = vmin.f32 %v1278_v37, 0.0 }
 0x8c3   :  { %v1295_v1 = vsub.f32 0.0, %v1294_v47 }
 0x8c5   :  { %v1296_v46 = vmul.f32 1.442695, %v1295_v1 }
 0x8c7   :  { %1616 = vpow2.f32 %v1296_v46 }
 0x8d1   :  { %v1617_v30 = vpop.eup %1616 }
 0x8d2   :  { %v1298_v61 = vadd.f32 1.0, %v1617_v30  ;;  %v1301_v34 = vmul.f32 -0.5, %v1617_v30  ;;  %v1304_v3 = vand.u32 2147483647, %v1617_v30 }
 0x8d4   :  { %1618 = vlog2.f32 %v1298_v61  ;;  %v1302_v38 = vadd.f32 1.0, %v1301_v34  ;;  %vm1305_vm7 = vcmp.lt.f32.partialorder %v1304_v3, 0.0004427343 }
 0x8d5   :  { %1620 = vpow2.f32 %v1435_v48 }
 0x8d6   :  { %v1303_v6 = vmul.f32 %v1617_v30, %v1302_v38  ;;  %1622 = vpow2.f32 %v1436_v49 }
 0x8de   :  { %v1619_v4 = vpop.eup %1618 }
 0x8df   :  { %v1300_v5 = vmul.f32 0.6931472, %v1619_v4  ;;  %v1621_v8 = vpop.eup %1620 }
 0x8e0   :  { %v1284_v13 = vadd.f32 1.0, %v1621_v8  ;;  %v1623_v19 = vpop.eup %1622 }
 0x8e1   :  { %v1306_v11 = vsel %vm1305_vm7, %v1303_v6, %v1300_v5  ;;  %v1290_v21 = vadd.f32 1.0, %v1623_v19 }
 0x8e2   :  { %v1307_v12 = vsub.f32 %v1293_v7, %v1306_v11  ;;  %1624 = vrcp.f32 %v1284_v13 }
 0x8e3   :  { %1626 = vtanh.f32 %v1276_v17 }
 0x8e4   :  { %v1308_v15 = vadd.f32 %v1307_v12, %v2502_v54 }
 0x8e6   :  { %v1309_v16 = vmax.f32 %v1308_v15, %v1277_v14 }
 0x8e8   :  { %v1310_v18 = vsub.f32 %v1277_v14, %v1309_v16 }
 0x8ea   :  { %v1311_v20 = vmul.f32 1.442695, %v1310_v18 }
 0x8ec   :  { %1628 = vpow2.f32 %v1311_v20  ;;  %v1625_v22 = vpop.eup %1624 }
 0x8ed   :  { %1630 = vrcp.f32 %v1290_v21  ;;  %v1627_v23 = vpop.eup %1626  ;;  %v1316_v43 = vmul.f32 %v1625_v22, %v2506_v28  ;;  %v1313_v56 = vmul.f32 %v1625_v22, %v2514_v39 }
 0x8f6   :  { %v1629_v45 = vpop.eup %1628 }
 0x8f7   :  { %v1314_v51 = vmul.f32 %v1629_v45, %v1627_v23  ;;  %v1317_v62 = vadd.f32 %v1629_v45, %v1316_v43  ;;  %v1631_v59 = vpop.eup %1630 }
 0x8f9   :  { %v1315_v54 = vadd.f32 %v1314_v51, %v1313_v56  ;;  %1632 = vrcp.f32 %v1317_v62  ;;  %1439 = vst [vmem:[%s2550_s4 + $0x38] sm:$0xff] %v1317_v62 }
 0x8fb   :  { %1438 = vst [vmem:[%s2551_s3 + $0x38] sm:$0xff] %v1315_v54  ;;  %v1318_v0 = vmul.f32 %v1631_v59, %v1315_v54 }
 0x903   :  { %v1633_v57 = vpop.eup %1632 }
 0x904   :  { %v1320_v24 = vmul.f32 %v1633_v57, %v1318_v0 }
 0x906   :  { %1437 = vst [vmem:[%s2552_s2 + $0x38] sm:$0xff] %v1320_v24 }

</bundles_post_ra>
